<compile_context>
chip_gen: v6e
topology: v6e:2x2x1
jax: 0.10.0
libtpu: 0.0.40
codegen_flags: <defaults>
</compile_context>

<pallas_src>
import functools

import jax
import jax.numpy as jnp
from jax import lax
from jax.experimental import pallas as pl
from jax.experimental.pallas import tpu as pltpu

HIDDEN = 300   # logical hidden width (PyTorch neuron_nums)
H_PAD = 384    # padded hidden width: 3 x 128 lanes (MXU/lane aligned)
A_PAD = 128    # padded action head width (lane aligned)


# ----------------------------------------------------------------------------
# Kernel
# ----------------------------------------------------------------------------
def _actor_kernel(deep_dims,
                  x_ref,     # (B, deep_dims)        f32  (concat [x, discrete_a])
                  w1_ref,    # (deep_dims, H_PAD)    bf16
                  w23_ref,   # (2, H_PAD, H_PAD)     bf16  (W2, W3 stacked)
                  w4_ref,    # (H_PAD, A_PAD)        bf16
                  vec_ref,   # (16, H_PAD)           f32   packed gammas/betas/b4
                  out_ref):  # (B, A_PAD)            f32   lane-dense padded output
    eps = jnp.float32(1e-5)
    B = x_ref.shape[0]
    n_inv = jnp.float32(1.0 / B)
    # Hoisted once; reused by every BN stats matmul.
    ones_row = jnp.ones((1, B), jnp.float32)

    def batchnorm(h, gamma, beta):
        # Training-mode BatchNorm1d in scale/shift form.
        # Per-feature batch stats on the MXU (f32 ones-row matmuls), then only
        # 2 VPU ops/element (mul, add) on the big (B, F) tensor.
        s = jnp.dot(ones_row, h, preferred_element_type=jnp.float32)        # (1, F)
        ss = jnp.dot(ones_row, h * h, preferred_element_type=jnp.float32)   # (1, F)
        mean = s * n_inv
        var = jnp.maximum(ss * n_inv - mean * mean, 0.0)   # biased var; clamp cancellation
        scale = gamma * lax.rsqrt(var + eps)
        shift = beta - mean * scale
        return h * scale + shift

    vec = vec_ref[...]
    g0, be0 = vec[0:1, :deep_dims], vec[1:2, :deep_dims]
    g1, be1 = vec[2:3, :], vec[3:4, :]
    g2, be2 = vec[4:5, :], vec[5:6, :]
    g3, be3 = vec[6:7, :], vec[7:8, :]
    b4 = vec[8:9, :A_PAD]

    # ---- bn_input over the concatenated [x, discrete_a] ---------------------
    xb = batchnorm(x_ref[...].astype(jnp.float32), g0, be0)

    # Hidden Linear biases omitted: training-mode BN's mean subtraction cancels
    # any per-feature constant exactly (zero numeric effect).
    # ---- layer 1: Linear -> BN -> ReLU --------------------------------------
    h = jnp.dot(xb.astype(jnp.bfloat16), w1_ref[...],
                preferred_element_type=jnp.float32)
    h = jnp.maximum(batchnorm(h, g1, be1), 0.0)

    # ---- layer 2: Linear -> BN -> ReLU --------------------------------------
    h = jnp.dot(h.astype(jnp.bfloat16), w23_ref[0],
                preferred_element_type=jnp.float32)
    h = jnp.maximum(batchnorm(h, g2, be2), 0.0)

    # ---- layer 3: Linear -> BN -> ReLU --------------------------------------
    h = jnp.dot(h.astype(jnp.bfloat16), w23_ref[1],
                preferred_element_type=jnp.float32)
    h = jnp.maximum(batchnorm(h, g3, be3), 0.0)

    # ---- output head: Linear -> Tanh, lane-dense 128-wide store -------------
    o = jnp.dot(h.astype(jnp.bfloat16), w4_ref[...],
                preferred_element_type=jnp.float32) + b4
    out_ref[...] = jnp.tanh(o).astype(out_ref.dtype)


# ----------------------------------------------------------------------------
# Wrapper
# ----------------------------------------------------------------------------
def continuous_actor_forward(x, discrete_a, params, input_dims, action_nums):
    """x: (B, input_dims), discrete_a: (B, 1). Returns (B, action_nums) f32."""
    B = x.shape[0]
    deep = input_dims + 1
    x_cat = jnp.concatenate(
        [x.astype(jnp.float32), discrete_a.astype(jnp.float32)], axis=1)

    kernel = functools.partial(_actor_kernel, deep)
    vmem = pl.BlockSpec(memory_space=pltpu.MemorySpace.VMEM)

    # Advisory cost estimate for XLA scheduling around the custom call.
    w_bytes = int((params["w1"].size + params["w23"].size + params["w4"].size) * 2
                  + params["vec"].size * 4)
    io_bytes = B * (deep + A_PAD) * 4
    matmul_flops = 2 * B * (deep * H_PAD + 2 * H_PAD * H_PAD + H_PAD * A_PAD)
    stats_flops = 4 * B * (deep + 3 * H_PAD)      # ones-row sum / sum-of-squares matmuls
    cost = pl.CostEstimate(flops=matmul_flops + stats_flops,
                           transcendentals=B * A_PAD + 4 * H_PAD,
                           bytes_accessed=w_bytes + io_bytes)

    # Whole-batch kernel (training-mode BN couples the whole batch); bound VMEM
    # so large B does not silently spill on v7x (64 MiB physical) / v5e defaults.
    # TODO(synk): for B >> ~4k rows switch to eval-mode folded BN (or two-pass
    # stats) + batch-grid BlockSpec tiling and megacore parallelism.
    act_bytes = B * (deep * 4 + A_PAD * 4 + 6 * H_PAD * 4)
    vmem_limit = int(min(max(w_bytes + act_bytes + (4 << 20), 32 << 20), 64 << 20))

    out_pad = pl.pallas_call(
        kernel,
        out_shape=jax.ShapeDtypeStruct((B, A_PAD), jnp.float32),
        in_specs=[vmem] * 5,
        out_specs=vmem,
        cost_estimate=cost,
        compiler_params=pltpu.CompilerParams(vmem_limit_bytes=vmem_limit),
    )(x_cat, params["w1"], params["w23"], params["w4"], params["vec"])
    # Lane-dense padded store inside the kernel; slice to the logical width here.
    return out_pad[:, :action_nums]


# ----------------------------------------------------------------------------
# Deterministic parameter construction (PyTorch-style Linear init),
# padded / packed into the kernel's operand layout.
# ----------------------------------------------------------------------------
def make_params(key, input_dims, action_nums, hidden=HIDDEN):
    deep = input_dims + 1
    fan_in = [deep, hidden, hidden, hidden]
    fan_out = [hidden, hidden, hidden, action_nums]
    keys = jax.random.split(key, 8)

    ws, bs = [], []
    for i in range(4):
        bound = 1.0 / (fan_in[i] ** 0.5)
        ws.append(jax.random.uniform(keys[2 * i], (fan_in[i], fan_out[i]),
                                     jnp.float32, -bound, bound))
        bs.append(jax.random.uniform(keys[2 * i + 1], (fan_out[i],),
                                     jnp.float32, -bound, bound))

    def pad_to(a, shape):
        out = jnp.zeros(shape, a.dtype)
        return out.at[tuple(slice(0, s) for s in a.shape)].set(a)

    w1 = pad_to(ws[0], (deep, H_PAD)).astype(jnp.bfloat16)
    w2 = pad_to(ws[1], (H_PAD, H_PAD)).astype(jnp.bfloat16)
    w3 = pad_to(ws[2], (H_PAD, H_PAD)).astype(jnp.bfloat16)
    w23 = jnp.stack([w2, w3], axis=0)
    w4 = pad_to(ws[3], (H_PAD, A_PAD)).astype(jnp.bfloat16)

    # Single lane/sublane-dense f32 slab of per-layer vectors (16, 384).
    # Row layout: 0 bn_input gamma, 1 bn_input beta,
    #             2/3 bn1 gamma/beta, 4/5 bn2 gamma/beta, 6/7 bn3 gamma/beta,
    #             8 head bias b4, 9-15 zero padding.
    # Hidden Linear biases bs[0..2] are NOT packed: training-mode BN cancels
    # them exactly.  TODO(synk): re-add them (and BN running stats) if the
    # deployed actor runs under model.eval().
    vec = jnp.zeros((16, H_PAD), jnp.float32)
    vec = vec.at[0, :deep].set(1.0)            # bn_input gamma = 1 (beta row 1 = 0)
    vec = vec.at[2, :hidden].set(1.0)          # bn1 gamma
    vec = vec.at[4, :hidden].set(1.0)          # bn2 gamma
    vec = vec.at[6, :hidden].set(1.0)          # bn3 gamma
    vec = vec.at[8, :action_nums].set(bs[3])   # head bias

    return {"w1": w1, "w23": w23, "w4": w4, "vec": vec}


if __name__ == "__main__":
    B = 8
    input_dims = 31          # -> deep_input_dims = 32
    action_nums = 4

    key = jax.random.PRNGKey(0)
    k_x, k_a, k_p = jax.random.split(key, 3)

    x = jax.random.normal(k_x, (B, input_dims), jnp.float32)
    # discrete action index as a float column, as in torch.cat([input, discrete_a])
    discrete_a = jax.random.randint(k_a, (B, 1), 0, action_nums).astype(jnp.float32)

    params = make_params(k_p, input_dims, action_nums)

    out = continuous_actor_forward(x, discrete_a, params, input_dims, action_nums)
    out = jax.block_until_ready(out)
    assert out.shape == (B, action_nums)
    assert bool(jnp.all(jnp.isfinite(out)))
    assert bool(jnp.all(jnp.abs(out) <= 1.0))   # tanh output range
    print("KERNEL_OK")
</pallas_src>

<mosaic_0001>
module attributes {stable_mosaic.version = 11 : i64} {
  func.func @_actor_kernel(%arg0: memref<8x32xf32, #tpu.memory_space<vmem>>, %arg1: memref<32x384xbf16, #tpu.memory_space<vmem>>, %arg2: memref<2x384x384xbf16, #tpu.memory_space<vmem>>, %arg3: memref<384x128xbf16, #tpu.memory_space<vmem>>, %arg4: memref<16x384xf32, #tpu.memory_space<vmem>>, %arg5: memref<8x128xf32, #tpu.memory_space<vmem>>) attributes {dimension_semantics = [], scalar_prefetch = 0 : i64, scratch_operands = 0 : i64, tpu.core_type = #tpu.core_type<tc>} {
    %cst = arith.constant 1.000000e+00 : f32
    %0 = vector.broadcast %cst : f32 to vector<1x8xf32>
    %c0 = arith.constant 0 : index
    %c0_0 = arith.constant 0 : index
    %1 = vector.load %arg4[%c0, %c0_0] : memref<16x384xf32, #tpu.memory_space<vmem>>, vector<16x384xf32>
    %2 = vector.extract_strided_slice %1 {offsets = [0, 0], sizes = [1, 32], strides = [1, 1]} : vector<16x384xf32> to vector<1x32xf32>
    %3 = vector.extract_strided_slice %1 {offsets = [1, 0], sizes = [1, 32], strides = [1, 1]} : vector<16x384xf32> to vector<1x32xf32>
    %4 = vector.extract_strided_slice %1 {offsets = [2, 0], sizes = [1, 384], strides = [1, 1]} : vector<16x384xf32> to vector<1x384xf32>
    %5 = vector.extract_strided_slice %1 {offsets = [3, 0], sizes = [1, 384], strides = [1, 1]} : vector<16x384xf32> to vector<1x384xf32>
    %6 = vector.extract_strided_slice %1 {offsets = [4, 0], sizes = [1, 384], strides = [1, 1]} : vector<16x384xf32> to vector<1x384xf32>
    %7 = vector.extract_strided_slice %1 {offsets = [5, 0], sizes = [1, 384], strides = [1, 1]} : vector<16x384xf32> to vector<1x384xf32>
    %8 = vector.extract_strided_slice %1 {offsets = [6, 0], sizes = [1, 384], strides = [1, 1]} : vector<16x384xf32> to vector<1x384xf32>
    %9 = vector.extract_strided_slice %1 {offsets = [7, 0], sizes = [1, 384], strides = [1, 1]} : vector<16x384xf32> to vector<1x384xf32>
    %10 = vector.extract_strided_slice %1 {offsets = [8, 0], sizes = [1, 128], strides = [1, 1]} : vector<16x384xf32> to vector<1x128xf32>
    %c0_1 = arith.constant 0 : index
    %c0_2 = arith.constant 0 : index
    %11 = vector.load %arg0[%c0_1, %c0_2] : memref<8x32xf32, #tpu.memory_space<vmem>>, vector<8x32xf32>
    %cst_3 = arith.constant dense<0.000000e+00> : vector<1x32xf32>
    %12 = tpu.matmul %0, %11, %cst_3 {dimension_numbers = #tpu.dot_dimension_numbers<[1], [0], [0], [1], [0, 0, 1, 1], [], []>} : vector<1x8xf32>, vector<8x32xf32>, vector<1x32xf32> -> vector<1x32xf32>
    %13 = arith.mulf %11, %11 : vector<8x32xf32>
    %cst_4 = arith.constant dense<0.000000e+00> : vector<1x32xf32>
    %14 = tpu.matmul %0, %13, %cst_4 {dimension_numbers = #tpu.dot_dimension_numbers<[1], [0], [0], [1], [0, 0, 1, 1], [], []>} : vector<1x8xf32>, vector<8x32xf32>, vector<1x32xf32> -> vector<1x32xf32>
    %cst_5 = arith.constant 1.250000e-01 : f32
    %15 = vector.broadcast %cst_5 : f32 to vector<1x32xf32>
    %16 = arith.mulf %12, %15 : vector<1x32xf32>
    %cst_6 = arith.constant 1.250000e-01 : f32
    %17 = vector.broadcast %cst_6 : f32 to vector<1x32xf32>
    %18 = arith.mulf %14, %17 : vector<1x32xf32>
    %19 = arith.mulf %16, %16 : vector<1x32xf32>
    %20 = arith.subf %18, %19 : vector<1x32xf32>
    %cst_7 = arith.constant 0.000000e+00 : f32
    %21 = vector.broadcast %cst_7 : f32 to vector<1x32xf32>
    %22 = arith.maximumf %20, %21 : vector<1x32xf32>
    %cst_8 = arith.constant 9.99999974E-6 : f32
    %23 = vector.broadcast %cst_8 : f32 to vector<1x32xf32>
    %24 = arith.addf %22, %23 : vector<1x32xf32>
    %25 = math.rsqrt %24 : vector<1x32xf32>
    %26 = arith.mulf %2, %25 : vector<1x32xf32>
    %27 = arith.mulf %16, %26 : vector<1x32xf32>
    %28 = arith.subf %3, %27 : vector<1x32xf32>
    %29 = vector.broadcast %26 : vector<1x32xf32> to vector<8x32xf32>
    %30 = arith.mulf %11, %29 : vector<8x32xf32>
    %31 = vector.broadcast %28 : vector<1x32xf32> to vector<8x32xf32>
    %32 = arith.addf %30, %31 : vector<8x32xf32>
    %33 = arith.truncf %32 : vector<8x32xf32> to vector<8x32xbf16>
    %c0_9 = arith.constant 0 : index
    %c0_10 = arith.constant 0 : index
    %34 = vector.load %arg1[%c0_9, %c0_10] : memref<32x384xbf16, #tpu.memory_space<vmem>>, vector<32x384xbf16>
    %cst_11 = arith.constant dense<0.000000e+00> : vector<8x384xf32>
    %35 = tpu.matmul %33, %34, %cst_11 {dimension_numbers = #tpu.dot_dimension_numbers<[1], [0], [0], [1], [0, 0, 1, 1], [], []>} : vector<8x32xbf16>, vector<32x384xbf16>, vector<8x384xf32> -> vector<8x384xf32>
    %cst_12 = arith.constant dense<0.000000e+00> : vector<1x384xf32>
    %36 = tpu.matmul %0, %35, %cst_12 {dimension_numbers = #tpu.dot_dimension_numbers<[1], [0], [0], [1], [0, 0, 1, 1], [], []>} : vector<1x8xf32>, vector<8x384xf32>, vector<1x384xf32> -> vector<1x384xf32>
    %37 = arith.mulf %35, %35 : vector<8x384xf32>
    %cst_13 = arith.constant dense<0.000000e+00> : vector<1x384xf32>
    %38 = tpu.matmul %0, %37, %cst_13 {dimension_numbers = #tpu.dot_dimension_numbers<[1], [0], [0], [1], [0, 0, 1, 1], [], []>} : vector<1x8xf32>, vector<8x384xf32>, vector<1x384xf32> -> vector<1x384xf32>
    %cst_14 = arith.constant 1.250000e-01 : f32
    %39 = vector.broadcast %cst_14 : f32 to vector<1x384xf32>
    %40 = arith.mulf %36, %39 : vector<1x384xf32>
    %cst_15 = arith.constant 1.250000e-01 : f32
    %41 = vector.broadcast %cst_15 : f32 to vector<1x384xf32>
    %42 = arith.mulf %38, %41 : vector<1x384xf32>
    %43 = arith.mulf %40, %40 : vector<1x384xf32>
    %44 = arith.subf %42, %43 : vector<1x384xf32>
    %cst_16 = arith.constant 0.000000e+00 : f32
    %45 = vector.broadcast %cst_16 : f32 to vector<1x384xf32>
    %46 = arith.maximumf %44, %45 : vector<1x384xf32>
    %cst_17 = arith.constant 9.99999974E-6 : f32
    %47 = vector.broadcast %cst_17 : f32 to vector<1x384xf32>
    %48 = arith.addf %46, %47 : vector<1x384xf32>
    %49 = math.rsqrt %48 : vector<1x384xf32>
    %50 = arith.mulf %4, %49 : vector<1x384xf32>
    %51 = arith.mulf %40, %50 : vector<1x384xf32>
    %52 = arith.subf %5, %51 : vector<1x384xf32>
    %53 = vector.broadcast %50 : vector<1x384xf32> to vector<8x384xf32>
    %54 = arith.mulf %35, %53 : vector<8x384xf32>
    %55 = vector.broadcast %52 : vector<1x384xf32> to vector<8x384xf32>
    %56 = arith.addf %54, %55 : vector<8x384xf32>
    %cst_18 = arith.constant 0.000000e+00 : f32
    %57 = vector.broadcast %cst_18 : f32 to vector<8x384xf32>
    %58 = arith.maximumf %56, %57 : vector<8x384xf32>
    %59 = arith.truncf %58 : vector<8x384xf32> to vector<8x384xbf16>
    %c0_19 = arith.constant 0 : index
    %c0_20 = arith.constant 0 : index
    %c0_21 = arith.constant 0 : index
    %60 = vector.load %arg2[%c0_19, %c0_20, %c0_21] : memref<2x384x384xbf16, #tpu.memory_space<vmem>>, vector<1x384x384xbf16>
    %61 = vector.shape_cast %60 : vector<1x384x384xbf16> to vector<384x384xbf16>
    %cst_22 = arith.constant dense<0.000000e+00> : vector<8x384xf32>
    %62 = tpu.matmul %59, %61, %cst_22 {dimension_numbers = #tpu.dot_dimension_numbers<[1], [0], [0], [1], [0, 0, 1, 1], [], []>} : vector<8x384xbf16>, vector<384x384xbf16>, vector<8x384xf32> -> vector<8x384xf32>
    %cst_23 = arith.constant dense<0.000000e+00> : vector<1x384xf32>
    %63 = tpu.matmul %0, %62, %cst_23 {dimension_numbers = #tpu.dot_dimension_numbers<[1], [0], [0], [1], [0, 0, 1, 1], [], []>} : vector<1x8xf32>, vector<8x384xf32>, vector<1x384xf32> -> vector<1x384xf32>
    %64 = arith.mulf %62, %62 : vector<8x384xf32>
    %cst_24 = arith.constant dense<0.000000e+00> : vector<1x384xf32>
    %65 = tpu.matmul %0, %64, %cst_24 {dimension_numbers = #tpu.dot_dimension_numbers<[1], [0], [0], [1], [0, 0, 1, 1], [], []>} : vector<1x8xf32>, vector<8x384xf32>, vector<1x384xf32> -> vector<1x384xf32>
    %cst_25 = arith.constant 1.250000e-01 : f32
    %66 = vector.broadcast %cst_25 : f32 to vector<1x384xf32>
    %67 = arith.mulf %63, %66 : vector<1x384xf32>
    %cst_26 = arith.constant 1.250000e-01 : f32
    %68 = vector.broadcast %cst_26 : f32 to vector<1x384xf32>
    %69 = arith.mulf %65, %68 : vector<1x384xf32>
    %70 = arith.mulf %67, %67 : vector<1x384xf32>
    %71 = arith.subf %69, %70 : vector<1x384xf32>
    %cst_27 = arith.constant 0.000000e+00 : f32
    %72 = vector.broadcast %cst_27 : f32 to vector<1x384xf32>
    %73 = arith.maximumf %71, %72 : vector<1x384xf32>
    %cst_28 = arith.constant 9.99999974E-6 : f32
    %74 = vector.broadcast %cst_28 : f32 to vector<1x384xf32>
    %75 = arith.addf %73, %74 : vector<1x384xf32>
    %76 = math.rsqrt %75 : vector<1x384xf32>
    %77 = arith.mulf %6, %76 : vector<1x384xf32>
    %78 = arith.mulf %67, %77 : vector<1x384xf32>
    %79 = arith.subf %7, %78 : vector<1x384xf32>
    %80 = vector.broadcast %77 : vector<1x384xf32> to vector<8x384xf32>
    %81 = arith.mulf %62, %80 : vector<8x384xf32>
    %82 = vector.broadcast %79 : vector<1x384xf32> to vector<8x384xf32>
    %83 = arith.addf %81, %82 : vector<8x384xf32>
    %cst_29 = arith.constant 0.000000e+00 : f32
    %84 = vector.broadcast %cst_29 : f32 to vector<8x384xf32>
    %85 = arith.maximumf %83, %84 : vector<8x384xf32>
    %86 = arith.truncf %85 : vector<8x384xf32> to vector<8x384xbf16>
    %c1 = arith.constant 1 : index
    %c0_30 = arith.constant 0 : index
    %c0_31 = arith.constant 0 : index
    %87 = vector.load %arg2[%c1, %c0_30, %c0_31] : memref<2x384x384xbf16, #tpu.memory_space<vmem>>, vector<1x384x384xbf16>
    %88 = vector.shape_cast %87 : vector<1x384x384xbf16> to vector<384x384xbf16>
    %cst_32 = arith.constant dense<0.000000e+00> : vector<8x384xf32>
    %89 = tpu.matmul %86, %88, %cst_32 {dimension_numbers = #tpu.dot_dimension_numbers<[1], [0], [0], [1], [0, 0, 1, 1], [], []>} : vector<8x384xbf16>, vector<384x384xbf16>, vector<8x384xf32> -> vector<8x384xf32>
    %cst_33 = arith.constant dense<0.000000e+00> : vector<1x384xf32>
    %90 = tpu.matmul %0, %89, %cst_33 {dimension_numbers = #tpu.dot_dimension_numbers<[1], [0], [0], [1], [0, 0, 1, 1], [], []>} : vector<1x8xf32>, vector<8x384xf32>, vector<1x384xf32> -> vector<1x384xf32>
    %91 = arith.mulf %89, %89 : vector<8x384xf32>
    %cst_34 = arith.constant dense<0.000000e+00> : vector<1x384xf32>
    %92 = tpu.matmul %0, %91, %cst_34 {dimension_numbers = #tpu.dot_dimension_numbers<[1], [0], [0], [1], [0, 0, 1, 1], [], []>} : vector<1x8xf32>, vector<8x384xf32>, vector<1x384xf32> -> vector<1x384xf32>
    %cst_35 = arith.constant 1.250000e-01 : f32
    %93 = vector.broadcast %cst_35 : f32 to vector<1x384xf32>
    %94 = arith.mulf %90, %93 : vector<1x384xf32>
    %cst_36 = arith.constant 1.250000e-01 : f32
    %95 = vector.broadcast %cst_36 : f32 to vector<1x384xf32>
    %96 = arith.mulf %92, %95 : vector<1x384xf32>
    %97 = arith.mulf %94, %94 : vector<1x384xf32>
    %98 = arith.subf %96, %97 : vector<1x384xf32>
    %cst_37 = arith.constant 0.000000e+00 : f32
    %99 = vector.broadcast %cst_37 : f32 to vector<1x384xf32>
    %100 = arith.maximumf %98, %99 : vector<1x384xf32>
    %cst_38 = arith.constant 9.99999974E-6 : f32
    %101 = vector.broadcast %cst_38 : f32 to vector<1x384xf32>
    %102 = arith.addf %100, %101 : vector<1x384xf32>
    %103 = math.rsqrt %102 : vector<1x384xf32>
    %104 = arith.mulf %8, %103 : vector<1x384xf32>
    %105 = arith.mulf %94, %104 : vector<1x384xf32>
    %106 = arith.subf %9, %105 : vector<1x384xf32>
    %107 = vector.broadcast %104 : vector<1x384xf32> to vector<8x384xf32>
    %108 = arith.mulf %89, %107 : vector<8x384xf32>
    %109 = vector.broadcast %106 : vector<1x384xf32> to vector<8x384xf32>
    %110 = arith.addf %108, %109 : vector<8x384xf32>
    %cst_39 = arith.constant 0.000000e+00 : f32
    %111 = vector.broadcast %cst_39 : f32 to vector<8x384xf32>
    %112 = arith.maximumf %110, %111 : vector<8x384xf32>
    %113 = arith.truncf %112 : vector<8x384xf32> to vector<8x384xbf16>
    %c0_40 = arith.constant 0 : index
    %c0_41 = arith.constant 0 : index
    %114 = vector.load %arg3[%c0_40, %c0_41] : memref<384x128xbf16, #tpu.memory_space<vmem>>, vector<384x128xbf16>
    %cst_42 = arith.constant dense<0.000000e+00> : vector<8x128xf32>
    %115 = tpu.matmul %113, %114, %cst_42 {dimension_numbers = #tpu.dot_dimension_numbers<[1], [0], [0], [1], [0, 0, 1, 1], [], []>} : vector<8x384xbf16>, vector<384x128xbf16>, vector<8x128xf32> -> vector<8x128xf32>
    %116 = vector.broadcast %10 : vector<1x128xf32> to vector<8x128xf32>
    %117 = arith.addf %115, %116 : vector<8x128xf32>
    %118 = math.tanh %117 : vector<8x128xf32>
    %c0_43 = arith.constant 0 : index
    %c0_44 = arith.constant 0 : index
    %119 = vector.load %arg5[%c0_43, %c0_44] : memref<8x128xf32, #tpu.memory_space<vmem>>, vector<8x128xf32>
    tpu.vector_store %arg5[%c0_43, %c0_44], %118 {strides = array<i32>} : memref<8x128xf32, #tpu.memory_space<vmem>>, vector<8x128xf32>,
    return
  }
}

</mosaic_0001>

<bundles_post_ra>
// kernel: tpu_custom_call.1
= control target key start
LH: loop header
LB: loop body
LE: loop exit
PB: predicated region body
PF: predicated region fallthrough
CT: control target
= control target key end

     0   :  { %10 = vsyncpa [#allocation3], 0  ;;  %s4163_s0 = inlined_call_operand.hbm [shape: f32[8,32], index: 0, kind: input, shape index: {}]   ;;  %s4164_s1 = inlined_call_operand.hbm [shape: bf16[32,384], index: 1, kind: input, shape index: {}]   ;;  %s4165_s2 = inlined_call_operand.hbm [shape: bf16[2,384,384], index: 2, kind: input, shape index: {}]   ;;  %s4166_s3 = inlined_call_operand.hbm [shape: bf16[384,128], index: 3, kind: input, shape index: {}]   ;;  %s4167_s4 = inlined_call_operand.hbm [shape: f32[16,384], index: 4, kind: input, shape index: {}]   ;;  %s4168_s5 = inlined_call_operand.hbm [shape: f32[8,128], index: 5, kind: output, shape index: {}]  }
   0x1   :  { %11 = vsyncpa [#allocation6], 0 }
   0x2   :  { %12 = vsyncpa [#allocation9], 0 }
   0x3   :  { %13 = vsyncpa [#allocation4], 0  ;;  %s3904_s18 = smov [#allocation5]  }
   0x4   :  { %s29_s19 = sshll.u32 %s3904_s18, 4  ;;  %s30_s19 = int_to_ptr.vmem [resolvable:$true] %s29_s19 }
   0x5   :  { %s3784_s20 = scalar_lea.vmem %s30_s19, 768  ;;  %p3789_p1 = scmp.lt.s32.totalorder %s30_s19, %s30_s19 }
   0x6   :  { %p3785_p0 = scmp.ne.s32.totalorder %s30_s19, %s3784_s20  ;;  %p3790_p2 = scmp.lt.s32.totalorder %s3784_s20, %s3784_s20 }
   0x8   :  { %p3791_p3 = por %p3790_p2, %p3789_p1 }
   0xa   :  { %p3792_p4 = pnand %p3791_p3, %p3785_p0 }
   0xc   :  { %3795 = shalt.err (!%p3792_p4)
}
   0xd   :  { %s3905_s21 = smov 192   ;;  %s3906_s22 = smov 12  }
   0xe   :  { %35 = dma.hbm_to_vmem [thread:$0]  %s4164_s1, 768, %s30_s19, [#allocation6], %s3905_s21, %s3905_s21, %s3906_s22  }
   0xf   :  { %s3907_s25 = smov [#allocation8]  }
  0x10   :  { %s53_s26 = sshll.u32 %s3907_s25, 4  ;;  %s54_s26 = int_to_ptr.vmem [resolvable:$true] %s53_s26 }
  0x11   :  { %s3804_s27 = scalar_lea.vmem %s54_s26, 3072  ;;  %p3809_p6 = scmp.lt.s32.totalorder %s54_s26, %s54_s26 }
  0x12   :  { %p3805_p5 = scmp.ne.s32.totalorder %s54_s26, %s3804_s27  ;;  %p3810_p7 = scmp.lt.s32.totalorder %s3804_s27, %s3804_s27 }
  0x14   :  { %p3811_p8 = por %p3810_p7, %p3809_p6 }
  0x16   :  { %p3812_p9 = pnand %p3811_p8, %p3805_p5 }
  0x18   :  { %3815 = shalt.err (!%p3812_p9)
}
  0x19   :  { %s3908_s28 = smov 64   ;;  %s3909_s29 = smov 4  }
  0x1a   :  { %59 = dma.hbm_to_vmem [thread:$0]  %s4166_s3, 3072, %s54_s26, [#allocation9], %s3908_s28, %s3908_s28, %s3909_s29  }
  0x1b   :  { %s3910_s7 = smov [#allocation2]   ;;  %s3911_s9 = smov [#allocation7]  }
  0x1c   :  { %s20_s8 = sshll.u32 %s3910_s7, 4  ;;  %s41_s1 = sshll.u32 %s3911_s9, 4  ;;  %s21_s8 = int_to_ptr.vmem [resolvable:$true] %s20_s8  ;;  %s42_s1 = int_to_ptr.vmem [resolvable:$true] %s41_s1 }
  0x1d   :  { %s3824_s10 = scalar_lea.vmem %s21_s8, 128  ;;  %p3829_p11 = scmp.lt.s32.totalorder %s21_s8, %s21_s8 }
  0x1e   :  { %p3825_p10 = scmp.ne.s32.totalorder %s21_s8, %s3824_s10  ;;  %p3830_p12 = scmp.lt.s32.totalorder %s3824_s10, %s3824_s10 }
  0x20   :  { %p3831_p13 = por %p3830_p12, %p3829_p11 }
  0x22   :  { %p3832_p0 = pnand %p3831_p13, %p3825_p10 }
  0x24   :  { %3835 = shalt.err (!%p3832_p0)
}
  0x25   :  { %23 = dma.hbm_to_vmem [thread:$0]  %s4163_s0, 128, %s21_s8, [#allocation3]  }
  0x26   :  { %s3844_s13 = scalar_lea.vmem %s42_s1, 18432  ;;  %p3849_p2 = scmp.lt.s32.totalorder %s42_s1, %s42_s1 }
  0x27   :  { %p3845_p1 = scmp.ne.s32.totalorder %s42_s1, %s3844_s13  ;;  %p3850_p3 = scmp.lt.s32.totalorder %s3844_s13, %s3844_s13 }
  0x29   :  { %p3851_p4 = por %p3850_p3, %p3849_p2 }
  0x2b   :  { %p3852_p5 = pnand %p3851_p4, %p3845_p1 }
  0x2d   :  { %3855 = shalt.err (!%p3852_p5)
}
  0x2e   :  { %47 = dma.hbm_to_vmem [thread:$0]  %s4165_s2, 18432, %s42_s1, [#allocation6], %s3905_s21, %s3905_s21, %s3906_s22  }
  0x2f   :  { %s3912_s15 = smov [#allocation10]  }
  0x30   :  { %s65_s16 = sshll.u32 %s3912_s15, 4  ;;  %s66_s16 = int_to_ptr.vmem [resolvable:$true] %s65_s16 }
  0x31   :  { %s3864_s17 = scalar_lea.vmem %s66_s16, 768  ;;  %p3869_p7 = scmp.lt.s32.totalorder %s66_s16, %s66_s16 }
  0x32   :  { %p3865_p6 = scmp.ne.s32.totalorder %s66_s16, %s3864_s17  ;;  %p3870_p8 = scmp.lt.s32.totalorder %s3864_s17, %s3864_s17 }
  0x34   :  { %p3871_p9 = por %p3870_p8, %p3869_p7 }
  0x36   :  { %p3872_p10 = pnand %p3871_p9, %p3865_p6 }
  0x38   :  { %3875 = shalt.err (!%p3872_p10)
}
  0x39   :  { %s3913_s0 = smov 384   ;;  %s3914_s18 = smov 24  }
  0x3a   :  { %71 = dma.hbm_to_vmem [thread:$0]  %s4167_s4, 768, %s66_s16, [#allocation9], %s3913_s0, %s3913_s0, %s3914_s18  }
  0x3b   :  { %3896 = dma.done.wait [#allocation3], 128  }
  0x3c   :  { %3897 = vsyncadd [#allocation3], 4294967168 }
  0x3d   :  { %3898 = dma.done.wait [#allocation6], 19200  }
  0x3e   :  { %3899 = vsyncadd [#allocation6], 4294948096 }
  0x3f   :  { %3900 = dma.done.wait [#allocation9], 3840  }
  0x40   :  { %3901 = vsyncadd [#allocation9], 4294963456  ;;  %v3915_v0 = vmov 0.0   ;;  %vm3916_vm0 = vmmov 0   ;;  %vm93_vm1 = vcmask 64512   ;;  %v92_v1 = vld [vmem:[#allocation2] sm:$0xff]  ;;  %v251_v21 = vlaneseq }
  0x41   :  { %3403 = vmatprep.subr.mxu0 %v3915_v0  ;;  %3405 = vmatprep.mubr.msk.f32.mxu0 %vm3916_vm0, %v3915_v0  ;;  %v167_v2 = vmul.f32 %v92_v1, %v92_v1  ;;  %v3917_v3 = vmov 1.0   ;;  %v3527_v4 = vld [vmem:[#allocation5 + $0x18] ss:$12 sps:$4 sm:$0xff]   ;;  %v3529_v5 = vld [vmem:[#allocation5 + $0x1c] ss:$12 sps:$4 sm:$0xff]   ;;  %v3918_v10 = vmov 0  }
  0x42   :  { %3408 = vmatprep.subr.mxu1 %v3915_v0  ;;  %3410 = vmatprep.mubr.msk.f32.mxu1 %vm3916_vm0, %v3915_v0  ;;  %v3530_v6 = vld [vmem:[#allocation5 + $0x20] ss:$12 sps:$4 sm:$0xff]   ;;  %v3533_v7 = vld [vmem:[#allocation5 + $0x4] ss:$12 sps:$4 sm:$0xff]   ;;  %v3534_v8 = vld [vmem:[#allocation5 + $0x8] ss:$12 sps:$4 sm:$0xff]  }
  0x43   :  { %3404 = vmatpush3.msra.mxu0 %v92_v1  ;;  %3409 = vmatpush3.msra.mxu1 %v167_v2  ;;  %v3531_v9 = vld [vmem:[#allocation5] ss:$12 sps:$4 sm:$0xff]   ;;  %v3987_v22 = vshrl.u32 %v251_v21, 7  ;;  %v3989_v23 = vld [vmem:[#allocation10] sm:$0xff]  ;;  %vm302_vm2 = vcmask 261120   ;;  %s3919_s2 = smov [#allocation11]  }
  0x44   :  { %3406 = vmatmul.mubr.msk.f32.vlgmr.msra.gmra.mxu0 %vm93_vm1, %v3917_v3  ;;  %3411 = vmatmul.mubr.msk.f32.vlgmr.msra.gmra.mxu1 %vm93_vm1, %v3917_v3  ;;  %v3537_v42 = vld [vmem:[#allocation7 + $0xac] ss:$12 sps:$4 sm:$0xff]   ;;  %v3535_v48 = vld [vmem:[#allocation7 + $0xa8] ss:$12 sps:$4 sm:$0xff]   ;;  %v3538_v50 = vld [vmem:[#allocation7 + $0x90] ss:$12 sps:$4 sm:$0xff]  }
  0x45   :  { %3413 = vmatprep.subr.bf16.mxu1 %v3915_v0  ;;  %3417 = vmatprep.mubr.msk.bf16.mxu1 %vm3916_vm0, %v3915_v0  ;;  %v253_v26 = vsub.s32 0, %v3987_v22  ;;  %v258_v30 = vsub.s32 1, %v3987_v22  ;;  %v3540_v49 = vld [vmem:[#allocation7 + $0x94] ss:$12 sps:$4 sm:$0xff]   ;;  %v3543_v51 = vld [vmem:[#allocation7 + $0x7c] ss:$12 sps:$4 sm:$0xff]  }
  0x46   :  { %318 = vmatprep.subr.bf16.mxu0 %v3529_v5  ;;  %3414 = vmatpush3.bf16.msra.mxu1 %v3530_v6  ;;  %v3541_v52 = vld [vmem:[#allocation7 + $0x78] ss:$12 sps:$4 sm:$0xff]   ;;  %v3544_v54 = vld [vmem:[#allocation7 + $0x60] ss:$12 sps:$4 sm:$0xff]   ;;  %v3547_v56 = vld [vmem:[#allocation7 + $0x48] ss:$12 sps:$4 sm:$0xff]  }
  0x47   :  { %319 = vmatpush1.bf16.msra.mxu0 %v3527_v4  ;;  %3415 = vmatprep.subr.bf16.mxu1 %v3915_v0  ;;  %v3546_v53 = vld [vmem:[#allocation7 + $0x64] ss:$12 sps:$4 sm:$0xff]   ;;  %v3549_v55 = vld [vmem:[#allocation7 + $0x4c] ss:$12 sps:$4 sm:$0xff]   ;;  %v3552_v57 = vld [vmem:[#allocation7 + $0x34] ss:$12 sps:$4 sm:$0xff]  }
  0x48   :  { %320 = vmatprep.subr.bf16.mxu0 %v3533_v7  ;;  %338 = vmatprep.mubr.bf16.mxu0 %v3918_v10  ;;  %v3550_v58 = vld [vmem:[#allocation7 + $0x30] ss:$12 sps:$4 sm:$0xff]   ;;  %v3553_v60 = vld [vmem:[#allocation7 + $0x18] ss:$12 sps:$4 sm:$0xff]   ;;  %v3556_v62 = vld [vmem:[#allocation7 + $0x228] ss:$12 sps:$4 sm:$0xff]  }
  0x49   :  { %v3555_v59 = vld [vmem:[#allocation7 + $0x1c] ss:$12 sps:$4 sm:$0xff]   ;;  %v3558_v61 = vld [vmem:[#allocation7 + $0x22c] ss:$12 sps:$4 sm:$0xff]   ;;  %v3561_v63 = vld [vmem:[#allocation7 + $0x4] ss:$12 sps:$4 sm:$0xff]  }
  0x4a   :  { %3416 = vmatpush3.bf16.msra.mxu1 %v3534_v8  ;;  %v3564_v2 = vld [vmem:[#allocation7 + $0x214] ss:$12 sps:$4 sm:$0xff]   ;;  %v3562_v4 = vld [vmem:[#allocation7 + $0x210] ss:$12 sps:$4 sm:$0xff]   ;;  %v3567_v5 = vld [vmem:[#allocation7 + $0x16c] ss:$12 sps:$4 sm:$0xff]  }
  0x4b   :  { %321 = vmatpush1.bf16.msra.mxu0 %v3531_v9  ;;  %3421 = vmatprep.subr.mxu1 %v3915_v0  ;;  %v3565_v6 = vld [vmem:[#allocation7 + $0x168] ss:$12 sps:$4 sm:$0xff]   ;;  %v3568_v8 = vld [vmem:[#allocation7 + $0x1f8] ss:$12 sps:$4 sm:$0xff]   ;;  %v3586_v21 = vld [vmem:[#allocation7 + $0x1b0] ss:$12 sps:$4 sm:$0xff]  }
  0x4c   :  { %v3570_v7 = vld [vmem:[#allocation7 + $0x1fc] ss:$12 sps:$4 sm:$0xff]   ;;  %v3573_v9 = vld [vmem:[#allocation7 + $0x154] ss:$12 sps:$4 sm:$0xff]   ;;  %s3090_s4 = sshll.u32 %s3919_s2, 4  ;;  %s3091_s4 = int_to_ptr.vmem [resolvable:$true] %s3090_s4 }
  0x4d   :  { %s3876_s21 = scalar_lea.vmem %s3091_s4, 128  ;;  %p3881_p12 = scmp.lt.s32.totalorder %s3091_s4, %s3091_s4 }
  0x4e   :  { %p3877_p11 = scmp.ne.s32.totalorder %s3091_s4, %s3876_s21  ;;  %p3882_p13 = scmp.lt.s32.totalorder %s3876_s21, %s3876_s21 }
  0x50   :  { %p3883_p0 = por %p3882_p13, %p3881_p12 }
  0x52   :  { %p3884_p1 = pnand %p3883_p0, %p3877_p11 }
 0x104   :  { %v163_v11 = vpop.f32.mrf.mxu0  ;;  %v234_v14 = vpop.f32.mrf.mxu1 }
 0x105   :  { %v238_v12 = vmul.f32 0.125, %v163_v11  ;;  %v239_v16 = vmul.f32 0.125, %v234_v14  ;;  %v3571_v11 = vld [vmem:[#allocation7 + $0x150] ss:$12 sps:$4 sm:$0xff]  }
 0x106   :  { %v3407_v13 = vpop.f32.mrf.mxu0  ;;  %v3412_v17 = vpop.f32.mrf.mxu1  ;;  %v3579_v14 = vld [vmem:[#allocation7 + $0x13c] ss:$12 sps:$4 sm:$0xff]  }
 0x107   :  { %v240_v15 = vmul.f32 %v238_v12, %v238_v12  ;;  %v3574_v13 = vld [vmem:[#allocation7 + $0x1e0] ss:$12 sps:$4 sm:$0xff]   ;;  %v3580_v17 = vld [vmem:[#allocation7 + $0x1c8] ss:$12 sps:$4 sm:$0xff]  }
 0x109   :  { %v241_v18 = vsub.f32 %v239_v16, %v240_v15  ;;  %v3577_v15 = vld [vmem:[#allocation7 + $0x138] ss:$12 sps:$4 sm:$0xff]  }
 0x10a   :  { %v3582_v16 = vld [vmem:[#allocation7 + $0x1cc] ss:$12 sps:$4 sm:$0xff]  }
 0x10b   :  { %v242_v19 = vmax.f32 %v241_v18, 0.0  ;;  %v3585_v18 = vld [vmem:[#allocation7 + $0x124] ss:$12 sps:$4 sm:$0xff]  }
 0x10d   :  { %v243_v20 = vadd.f32 1e-05, %v242_v19  ;;  %v3583_v19 = vld [vmem:[#allocation7 + $0x120] ss:$12 sps:$4 sm:$0xff]  }
 0x10f   :  { %3751 = vrsqrt.f32 %v243_v20  ;;  %v3588_v20 = vld [vmem:[#allocation7 + $0x1b4] ss:$12 sps:$4 sm:$0xff]  }
 0x11c   :  { %v3752_v24 = vpop.eup %3751 }
 0x11d   :  { %v245_v25 = vmul.f32 %v3752_v24, %v3989_v23  ;;  %v3591_v24 = vld [vmem:[#allocation7 + $0x10c] ss:$12 sps:$4 sm:$0xff]  }
 0x11f   :  { %v246_v27 = vmul.f32 %v245_v25, %v238_v12  ;;  %v254_v29 = vrot.slane %v245_v25, %v253_v26  ;;  %v3576_v12 = vld [vmem:[#allocation7 + $0x1e4] ss:$12 sps:$4 sm:$0xff]   ;;  %v3589_v25 = vld [vmem:[#allocation7 + $0x108] ss:$12 sps:$4 sm:$0xff]  }
 0x121   :  { %v248_v28 = vrot.slane %v246_v27, 7  ;;  %v255_v32 = vmul.f32 %v254_v29, %v92_v1  ;;  %v3559_v1 = vld [vmem:[#allocation7] ss:$12 sps:$4 sm:$0xff]   ;;  %v3594_v27 = vld [vmem:[#allocation7 + $0x19c] ss:$12 sps:$4 sm:$0xff]  }
 0x122   :  { %v3595_v29 = vld [vmem:[#allocation7 + $0xf0] ss:$12 sps:$4 sm:$0xff]  }
 0x123   :  { %v250_v31 = vsub.f32 %v3989_v23, %v248_v28  ;;  %v3592_v28 = vld [vmem:[#allocation7 + $0x198] ss:$12 sps:$4 sm:$0xff]  }
 0x125   :  { %v259_v33 = vrot.slane %v250_v31, %v258_v30  ;;  %v3597_v30 = vld [vmem:[#allocation7 + $0xf4] ss:$12 sps:$4 sm:$0xff]  }
 0x126   :  { %v3598_v31 = vld [vmem:[#allocation7 + $0x180] ss:$12 sps:$4 sm:$0xff]  }
 0x127   :  { %v260_v34 = vadd.f32 %v259_v33, %v255_v32  ;;  %v3600_v32 = vld [vmem:[#allocation7 + $0x184] ss:$12 sps:$4 sm:$0xff]   ;;  %v3603_v33 = vld [vmem:[#allocation7 + $0xdc] ss:$12 sps:$4 sm:$0xff]  }
 0x129   :  { %v261_v35 = vpack.c.bf16 %v260_v34, %v260_v34  ;;  %v3604_v34 = vld [vmem:[#allocation7 + $0x170] ss:$12 sps:$4 sm:$0xff]  }
 0x12b   :  { %3109 = vmatmul.mubr.msk.bf16.vlgmr.msra.gmra.mxu0 %vm302_vm2, %v261_v35  ;;  %3418 = vmatmul.mubr.msk.bf16.vlgmr.msra.gmra.mxu1 %vm302_vm2, %v261_v35  ;;  %v3601_v35 = vld [vmem:[#allocation7 + $0xd8] ss:$12 sps:$4 sm:$0xff]  }
 0x12c   :  { %3423 = vmatprep.mubr.msk.f32.mxu1 %vm3916_vm0, %v3915_v0  ;;  %451 = vmatprep.mubr.f32.mxu0 %v3915_v0 }
 0x1eb   :  { %v4000_v36 = vpop.f32.mrf.mxu0  ;;  %v4002_v37 = vpop.f32.mrf.mxu1 }
 0x1ec   :  { %v530_v38 = vmul.f32 %v4002_v37, %v4002_v37  ;;  %3422 = vmatpush3.msra.mxu1 %v4002_v37  ;;  %v528_v43 = vmul.f32 %v4000_v36, %v4000_v36 }
 0x1ed   :  { %v4007_v39 = vpop.f32.mrf.mxu0  ;;  %v3419_v40 = vpop.f32.mrf.mxu1  ;;  %3424 = vmatmul.mubr.msk.f32.vlgmr.msra.gmra.mxu1 %vm93_vm1, %v3917_v3  ;;  %3426 = vmatprep.subr.mxu1 %v3915_v0 }
 0x1ee   :  { %v529_v41 = vmul.f32 %v4007_v39, %v4007_v39  ;;  %417 = vmatprep.subr.mxu0 %v4007_v39  ;;  %3427 = vmatpush3.msra.mxu1 %v530_v38  ;;  %v3608_v38 = vld [vmem:[#allocation7 + $0xc4] ss:$12 sps:$4 sm:$0xff]   ;;  %v3606_v40 = vld [vmem:[#allocation7 + $0xc0] ss:$12 sps:$4 sm:$0xff]  }
 0x1ef   :  { %v344_v44 = vpop.f32.mrf.mxu0  ;;  %v384_v45 = vpop.f32.mrf.mxu1  ;;  %418 = vmatpush1.msra.mxu0 %v4000_v36  ;;  %3428 = vmatprep.mubr.msk.f32.mxu1 %vm3916_vm0, %v3915_v0 }
 0x1f0   :  { %3111 = vmatmul.mubr.msk.f32.vlgmr.msra.gmra.mxu0 %vm93_vm1, %v3917_v3  ;;  %561 = vmatprep.subr.mxu0 %v529_v41 }
 0x1f1   :  { %v345_v46 = vpop.f32.mrf.mxu0  ;;  %v3420_v47 = vpop.f32.mrf.mxu1  ;;  %562 = vmatpush1.msra.mxu0 %v528_v43  ;;  %3429 = vmatmul.mubr.msk.f32.vlgmr.msra.gmra.mxu1 %vm93_vm1, %v3917_v3 }
 0x1f2   :  { %595 = vmatprep.mubr.f32.mxu0 %v3915_v0  ;;  %1245 = vmatprep.subr.bf16.mxu0 %v3537_v42 }
 0x1f3   :  { %1318 = vmatprep.mubr.bf16.mxu1 %v3918_v10  ;;  %1286 = vmatprep.subr.bf16.mxu1 %v3558_v61 }
 0x1f4   :  { %3113 = vmatmul.mubr.msk.f32.vlgmr.msra.gmra.mxu0 %vm93_vm1, %v3917_v3  ;;  %1287 = vmatpush1.bf16.msra.mxu1 %v3556_v62 }
 0x1f5   :  { %1246 = vmatpush1.bf16.msra.mxu0 %v3535_v48  ;;  %1288 = vmatprep.subr.bf16.mxu1 %v3564_v2 }
 0x1f6   :  { %1247 = vmatprep.subr.bf16.mxu0 %v3540_v49 }
 0x1f8   :  { %1289 = vmatpush1.bf16.msra.mxu1 %v3562_v4 }
 0x1f9   :  { %1248 = vmatpush1.bf16.msra.mxu0 %v3538_v50  ;;  %1290 = vmatprep.subr.bf16.mxu1 %v3570_v7 }
 0x1fa   :  { %1249 = vmatprep.subr.bf16.mxu0 %v3543_v51 }
 0x1fc   :  { %1291 = vmatpush1.bf16.msra.mxu1 %v3568_v8 }
 0x1fd   :  { %1250 = vmatpush1.bf16.msra.mxu0 %v3541_v52  ;;  %1292 = vmatprep.subr.bf16.mxu1 %v3576_v12 }
 0x1fe   :  { %1251 = vmatprep.subr.bf16.mxu0 %v3546_v53 }
 0x200   :  { %1293 = vmatpush1.bf16.msra.mxu1 %v3574_v13 }
 0x201   :  { %1252 = vmatpush1.bf16.msra.mxu0 %v3544_v54  ;;  %1294 = vmatprep.subr.bf16.mxu1 %v3582_v16 }
 0x202   :  { %1253 = vmatprep.subr.bf16.mxu0 %v3549_v55 }
 0x204   :  { %1295 = vmatpush1.bf16.msra.mxu1 %v3580_v17 }
 0x205   :  { %1254 = vmatpush1.bf16.msra.mxu0 %v3547_v56  ;;  %1296 = vmatprep.subr.bf16.mxu1 %v3588_v20 }
 0x206   :  { %1255 = vmatprep.subr.bf16.mxu0 %v3552_v57 }
 0x208   :  { %1297 = vmatpush1.bf16.msra.mxu1 %v3586_v21 }
 0x209   :  { %1256 = vmatpush1.bf16.msra.mxu0 %v3550_v58  ;;  %1298 = vmatprep.subr.bf16.mxu1 %v3594_v27 }
 0x20a   :  { %1257 = vmatprep.subr.bf16.mxu0 %v3555_v59 }
 0x20c   :  { %1299 = vmatpush1.bf16.msra.mxu1 %v3592_v28 }
 0x20d   :  { %1258 = vmatpush1.bf16.msra.mxu0 %v3553_v60  ;;  %1300 = vmatprep.subr.bf16.mxu1 %v3600_v32 }
 0x20e   :  { %1259 = vmatprep.subr.bf16.mxu0 %v3561_v63 }
 0x210   :  { %1301 = vmatpush1.bf16.msra.mxu1 %v3598_v31 }
 0x211   :  { %1260 = vmatpush1.bf16.msra.mxu0 %v3559_v1  ;;  %3302 = vmatprep.subr.bf16.mxu1 %v3604_v34 }
 0x212   :  { %1261 = vmatprep.subr.bf16.mxu0 %v3567_v5 }
 0x215   :  { %1262 = vmatpush2.bf16.msra.mxu0 %v3565_v6  ;;  %v4029_v6 = vld [vmem:[#allocation10 + $0x10] sm:$0xff] }
 0x216   :  { %1263 = vmatprep.subr.bf16.mxu0 %v3573_v9 }
 0x219   :  { %1264 = vmatpush2.bf16.msra.mxu0 %v3571_v11 }
 0x21a   :  { %1265 = vmatprep.subr.bf16.mxu0 %v3579_v14  ;;  %v731_v14 = vsub.s32 2, %v3987_v22 }
 0x21d   :  { %1266 = vmatpush2.bf16.msra.mxu0 %v3577_v15  ;;  %v4033_v15 = vld [vmem:[#allocation10 + $0x8] sm:$0xff] }
 0x21e   :  { %1267 = vmatprep.subr.bf16.mxu0 %v3585_v18 }
 0x221   :  { %1268 = vmatpush2.bf16.msra.mxu0 %v3583_v19 }
 0x222   :  { %1269 = vmatprep.subr.bf16.mxu0 %v3591_v24 }
 0x225   :  { %1270 = vmatpush2.bf16.msra.mxu0 %v3589_v25  ;;  %v746_v25 = vsub.s32 3, %v3987_v22 }
 0x226   :  { %1271 = vmatprep.subr.bf16.mxu0 %v3597_v30 }
 0x229   :  { %1272 = vmatpush2.bf16.msra.mxu0 %v3595_v29 }
 0x22a   :  { %1273 = vmatprep.subr.bf16.mxu0 %v3603_v33 }
 0x22d   :  { %1274 = vmatpush2.bf16.msra.mxu0 %v3601_v35 }
 0x22e   :  { %1275 = vmatprep.subr.bf16.mxu0 %v3608_v38 }
 0x231   :  { %1276 = vmatpush2.bf16.msra.mxu0 %v3606_v40 }
 0x232   :  { %3431 = vmatprep.subr.bf16.mxu0 %v3915_v0 }
 0x2ad   :  { %v524_v41 = vpop.f32.mrf.mxu1 }
 0x2ae   :  { %v674_v42 = vmul.f32 0.125, %v524_v41 }
 0x2af   :  { %v3425_v43 = vpop.f32.mrf.mxu1 }
 0x2b0   :  { %v680_v44 = vmul.f32 %v674_v42, %v674_v42  ;;  %v453_v45 = vpop.f32.mrf.mxu0 }
 0x2b1   :  { %v672_v46 = vmul.f32 0.125, %v453_v45  ;;  %v668_v47 = vpop.f32.mrf.mxu1 }
 0x2b2   :  { %v677_v48 = vmul.f32 0.125, %v668_v47  ;;  %v455_v49 = vpop.f32.mrf.mxu0 }
 0x2b3   :  { %v673_v50 = vmul.f32 0.125, %v455_v49  ;;  %v3430_v51 = vpop.f32.mrf.mxu1  ;;  %v678_v54 = vmul.f32 %v672_v46, %v672_v46 }
 0x2b4   :  { %v683_v52 = vsub.f32 %v677_v48, %v680_v44  ;;  %v597_v53 = vpop.f32.mrf.mxu0 }
 0x2b5   :  { %v675_v55 = vmul.f32 0.125, %v597_v53  ;;  %v679_v58 = vmul.f32 %v673_v50, %v673_v50  ;;  %v3610_v53 = vld [vmem:[#allocation7 + $0x98] ss:$12 sps:$4 sm:$0xff]  }
 0x2b6   :  { %v686_v56 = vmax.f32 %v683_v52, 0.0  ;;  %v599_v57 = vpop.f32.mrf.mxu0 }
 0x2b7   :  { %v681_v59 = vsub.f32 %v675_v55, %v678_v54  ;;  %v676_v60 = vmul.f32 0.125, %v599_v57 }
 0x2b8   :  { %v689_v61 = vadd.f32 1e-05, %v686_v56  ;;  %v3612_v56 = vld [vmem:[#allocation7 + $0x140] ss:$12 sps:$4 sm:$0xff]  }
 0x2b9   :  { %v684_v62 = vmax.f32 %v681_v59, 0.0  ;;  %v682_v63 = vsub.f32 %v676_v60, %v679_v58  ;;  %v3615_v58 = vld [vmem:[#allocation7 + $0x128] ss:$12 sps:$4 sm:$0xff]   ;;  %v3614_v59 = vld [vmem:[#allocation7 + $0x218] ss:$12 sps:$4 sm:$0xff]  }
 0x2ba   :  { %3753 = vrsqrt.f32 %v689_v61  ;;  %v3616_v60 = vld [vmem:[#allocation7 + $0x68] ss:$12 sps:$4 sm:$0xff]   ;;  %v3618_v61 = vld [vmem:[#allocation7 + $0x110] ss:$12 sps:$4 sm:$0xff]  }
 0x2bb   :  { %v687_v1 = vadd.f32 1e-05, %v684_v62  ;;  %v685_v2 = vmax.f32 %v682_v63, 0.0  ;;  %v3617_v62 = vld [vmem:[#allocation7 + $0x200] ss:$12 sps:$4 sm:$0xff]  }
 0x2bc   :  { %v3619_v63 = vld [vmem:[#allocation7 + $0x50] ss:$12 sps:$4 sm:$0xff]  }
 0x2bd   :  { %3755 = vrsqrt.f32 %v687_v1  ;;  %v688_v4 = vadd.f32 1e-05, %v685_v2  ;;  %v3621_v1 = vld [vmem:[#allocation7 + $0xf8] ss:$12 sps:$4 sm:$0xff]   ;;  %v3620_v2 = vld [vmem:[#allocation7 + $0x1e8] ss:$12 sps:$4 sm:$0xff]  }
 0x2bf   :  { %3757 = vrsqrt.f32 %v688_v4  ;;  %v3622_v4 = vld [vmem:[#allocation7 + $0x38] ss:$12 sps:$4 sm:$0xff]  }
 0x2c7   :  { %v3754_v5 = vpop.eup %3753 }
 0x2c8   :  { %v698_v7 = vrot.slane %v3754_v5, 6  ;;  %v3624_v5 = vld [vmem:[#allocation7 + $0xe0] ss:$12 sps:$4 sm:$0xff]  }
 0x2ca   :  { %v3756_v8 = vpop.eup %3755  ;;  %v704_v9 = vmul.f32 %v698_v7, %v4029_v6  ;;  %v3623_v7 = vld [vmem:[#allocation7 + $0x1d0] ss:$12 sps:$4 sm:$0xff]  }
 0x2cb   :  { %v696_v11 = vrot.slane %v3756_v8, 6  ;;  %v3625_v8 = vld [vmem:[#allocation7 + $0x20] ss:$12 sps:$4 sm:$0xff]  }
 0x2cc   :  { %v3758_v12 = vpop.eup %3757  ;;  %v710_v13 = vrot.slane %v704_v9, 2  ;;  %v740_v24 = vrot.slane %v704_v9, %v731_v14  ;;  %v3627_v9 = vld [vmem:[#allocation7 + $0xc8] ss:$12 sps:$4 sm:$0xff]  }
 0x2cd   :  { %v702_v16 = vmul.f32 %v696_v11, %v3989_v23  ;;  %v697_v17 = vrot.slane %v3758_v12, 6  ;;  %v3626_v11 = vld [vmem:[#allocation7 + $0x1b8] ss:$12 sps:$4 sm:$0xff]   ;;  %v3628_v12 = vld [vmem:[#allocation7 + $0x8] ss:$12 sps:$4 sm:$0xff]  }
 0x2ce   :  { %v716_v18 = vmul.f32 %v710_v13, %v674_v42  ;;  %v743_v33 = vmul.f32 %v740_v24, %v4002_v37  ;;  %v3609_v37 = vld [vmem:[#allocation7 + $0x158] ss:$12 sps:$4 sm:$0xff]   ;;  %v3629_v13 = vld [vmem:[#allocation7 + $0x1a0] ss:$12 sps:$4 sm:$0xff]  }
 0x2cf   :  { %v708_v19 = vrot.slane %v702_v16, 2  ;;  %v703_v20 = vmul.f32 %v697_v17, %v4033_v15  ;;  %v732_v31 = vrot.slane %v702_v16, %v731_v14 }
 0x2d0   :  { %v722_v21 = vrot.slane %v716_v18, 5 }
 0x2d1   :  { %v714_v27 = vmul.f32 %v708_v19, %v672_v46  ;;  %v709_v28 = vrot.slane %v703_v20, 2  ;;  %v736_v38 = vrot.slane %v703_v20, %v731_v14  ;;  %v741_v43 = vmul.f32 %v732_v31, %v4000_v36  ;;  %v3605_v46 = vld [vmem:[#allocation7 + $0xb0] ss:$12 sps:$4 sm:$0xff]   ;;  %v3630_v14 = vld [vmem:[#allocation7 + $0x188] ss:$12 sps:$4 sm:$0xff]  }
 0x2d2   :  { %v728_v29 = vsub.f32 %v4029_v6, %v722_v21  ;;  %v3611_v36 = vld [vmem:[#allocation7 + $0x230] ss:$12 sps:$4 sm:$0xff]  }
 0x2d3   :  { %v720_v30 = vrot.slane %v714_v27, 5  ;;  %v715_v32 = vmul.f32 %v709_v28, %v673_v50  ;;  %v742_v47 = vmul.f32 %v736_v38, %v4007_v39  ;;  %v3613_v39 = vld [vmem:[#allocation7 + $0x80] ss:$12 sps:$4 sm:$0xff]  }
 0x2d4   :  { %v755_v34 = vrot.slane %v728_v29, %v746_v25 }
 0x2d5   :  { %v721_v35 = vrot.slane %v715_v32, 5  ;;  %v726_v40 = vsub.f32 %v3989_v23, %v720_v30 }
 0x2d6   :  { %v758_v41 = vadd.f32 %v755_v34, %v743_v33 }
 0x2d7   :  { %v727_v42 = vsub.f32 %v4033_v15, %v721_v35  ;;  %v747_v44 = vrot.slane %v726_v40, %v746_v25 }
 0x2d8   :  { %v761_v45 = vmax.f32 %v758_v41, 0.0 }
 0x2d9   :  { %v751_v48 = vrot.slane %v727_v42, %v746_v25  ;;  %v756_v49 = vadd.f32 %v747_v44, %v741_v43  ;;  %v3633_v43 = vld [vmem:[#allocation7 + $0x2ec] ss:$12 sps:$4 sm:$0xff]  }
 0x2da   :  { %v4044_v50 = vpack.c.bf16 %v761_v45, %v761_v45  ;;  %v3631_v45 = vld [vmem:[#allocation7 + $0x2e8] ss:$12 sps:$4 sm:$0xff]  }
 0x2db   :  { %v757_v51 = vadd.f32 %v751_v48, %v742_v47  ;;  %v759_v52 = vmax.f32 %v756_v49, 0.0  ;;  %v3634_v47 = vld [vmem:[#allocation7 + $0x2d0] ss:$12 sps:$4 sm:$0xff]   ;;  %v3637_v49 = vld [vmem:[#allocation7 + $0x2b8] ss:$12 sps:$4 sm:$0xff]  }
 0x2dc   :  { %1319 = vmatmul.mubr.bf16.vlgmr.msra.gmra.mxu1 %v4044_v50  ;;  %v3639_v48 = vld [vmem:[#allocation7 + $0x2bc] ss:$12 sps:$4 sm:$0xff]  }
 0x2dd   :  { %3303 = vmatpush3.bf16.msra.mxu1 %v3605_v46  ;;  %v760_v54 = vmax.f32 %v757_v51, 0.0  ;;  %v762_v57 = vpack.c.bf16 %v759_v52, %v759_v52  ;;  %v3636_v46 = vld [vmem:[#allocation7 + $0x2d4] ss:$12 sps:$4 sm:$0xff]   ;;  %v3645_v51 = vld [vmem:[#allocation7 + $0x28c] ss:$12 sps:$4 sm:$0xff]  }
 0x2de   :  { %3304 = vmatprep.subr.bf16.mxu1 %v3609_v37  ;;  %v3642_v37 = vld [vmem:[#allocation7 + $0x2a4] ss:$12 sps:$4 sm:$0xff]   ;;  %v3643_v52 = vld [vmem:[#allocation7 + $0x288] ss:$12 sps:$4 sm:$0xff]  }
 0x2df   :  { %v763_v55 = vpack.c.bf16 %v760_v54, %v760_v54  ;;  %v3646_v54 = vld [vmem:[#allocation7 + $0x270] ss:$12 sps:$4 sm:$0xff]  }
 0x2e1   :  { %3305 = vmatpush3.bf16.msra.mxu1 %v3610_v53  ;;  %1277 = vmatprep.mubr.bf16.mxu0 %v763_v55  ;;  %v3648_v53 = vld [vmem:[#allocation7 + $0x274] ss:$12 sps:$4 sm:$0xff]  }
 0x2e2   :  { %1359 = vmatprep.mubr.bf16.mxu1 %v763_v55  ;;  %1278 = vmatmul.mubr.bf16.vlgmr.msra.gmra.mxu0 %v762_v57  ;;  %v3651_v55 = vld [vmem:[#allocation7 + $0x25c] ss:$12 sps:$4 sm:$0xff]  }
 0x2e3   :  { %3432 = vmatpush3.bf16.msra.mxu0 %v3611_v36  ;;  %3306 = vmatprep.subr.bf16.mxu1 %v3612_v56  ;;  %v3649_v36 = vld [vmem:[#allocation7 + $0x258] ss:$12 sps:$4 sm:$0xff]  }
 0x2e4   :  { %3433 = vmatprep.subr.bf16.mxu0 %v3915_v0  ;;  %3447 = vmatprep.mubr.msk.bf16.mxu0 %vm3916_vm0, %v3915_v0  ;;  %v3654_v56 = vld [vmem:[#allocation7 + $0x244] ss:$12 sps:$4 sm:$0xff]  }
 0x2e5   :  { %3307 = vmatpush3.bf16.msra.mxu1 %v3613_v39  ;;  %v3657_v39 = vld [vmem:[#allocation7 + $0x3ac] ss:$12 sps:$4 sm:$0xff]  }
 0x2e6   :  { %3308 = vmatprep.subr.bf16.mxu1 %v3615_v58  ;;  %v3655_v58 = vld [vmem:[#allocation7 + $0x3a8] ss:$12 sps:$4 sm:$0xff]  }
 0x2e7   :  { %3434 = vmatpush3.bf16.msra.mxu0 %v3614_v59  ;;  %v3660_v59 = vld [vmem:[#allocation7 + $0x46c] ss:$12 sps:$4 sm:$0xff]  }
 0x2e8   :  { %3435 = vmatprep.subr.bf16.mxu0 %v3915_v0 }
 0x2e9   :  { %3309 = vmatpush3.bf16.msra.mxu1 %v3616_v60  ;;  %v3658_v60 = vld [vmem:[#allocation7 + $0x468] ss:$12 sps:$4 sm:$0xff]  }
 0x2ea   :  { %3310 = vmatprep.subr.bf16.mxu1 %v3618_v61  ;;  %v3663_v61 = vld [vmem:[#allocation7 + $0x394] ss:$12 sps:$4 sm:$0xff]  }
 0x2eb   :  { %3436 = vmatpush3.bf16.msra.mxu0 %v3617_v62  ;;  %v3661_v62 = vld [vmem:[#allocation7 + $0x390] ss:$12 sps:$4 sm:$0xff]  }
 0x2ec   :  { %3437 = vmatprep.subr.bf16.mxu0 %v3915_v0 }
 0x2ed   :  { %3311 = vmatpush3.bf16.msra.mxu1 %v3619_v63  ;;  %v3666_v63 = vld [vmem:[#allocation7 + $0x454] ss:$12 sps:$4 sm:$0xff]  }
 0x2ee   :  { %3312 = vmatprep.subr.bf16.mxu1 %v3621_v1  ;;  %v3664_v1 = vld [vmem:[#allocation7 + $0x450] ss:$12 sps:$4 sm:$0xff]  }
 0x2ef   :  { %3438 = vmatpush3.bf16.msra.mxu0 %v3620_v2  ;;  %v3669_v2 = vld [vmem:[#allocation7 + $0x37c] ss:$12 sps:$4 sm:$0xff]  }
 0x2f0   :  { %3439 = vmatprep.subr.bf16.mxu0 %v3915_v0 }
 0x2f1   :  { %3313 = vmatpush3.bf16.msra.mxu1 %v3622_v4  ;;  %v3667_v4 = vld [vmem:[#allocation7 + $0x378] ss:$12 sps:$4 sm:$0xff]  }
 0x2f2   :  { %3314 = vmatprep.subr.bf16.mxu1 %v3624_v5  ;;  %v3672_v5 = vld [vmem:[#allocation7 + $0x43c] ss:$12 sps:$4 sm:$0xff]  }
 0x2f3   :  { %3440 = vmatpush3.bf16.msra.mxu0 %v3623_v7  ;;  %v3670_v7 = vld [vmem:[#allocation7 + $0x438] ss:$12 sps:$4 sm:$0xff]  }
 0x2f4   :  { %3441 = vmatprep.subr.bf16.mxu0 %v3915_v0 }
 0x2f5   :  { %3315 = vmatpush3.bf16.msra.mxu1 %v3625_v8  ;;  %v3675_v8 = vld [vmem:[#allocation7 + $0x364] ss:$12 sps:$4 sm:$0xff]  }
 0x2f6   :  { %3316 = vmatprep.subr.bf16.mxu1 %v3627_v9  ;;  %v3673_v9 = vld [vmem:[#allocation7 + $0x360] ss:$12 sps:$4 sm:$0xff]  }
 0x2f7   :  { %3442 = vmatpush3.bf16.msra.mxu0 %v3626_v11  ;;  %v3678_v11 = vld [vmem:[#allocation7 + $0x424] ss:$12 sps:$4 sm:$0xff]  }
 0x2f8   :  { %3443 = vmatprep.subr.bf16.mxu0 %v3915_v0 }
 0x2f9   :  { %3317 = vmatpush3.bf16.msra.mxu1 %v3628_v12  ;;  %v3676_v12 = vld [vmem:[#allocation7 + $0x420] ss:$12 sps:$4 sm:$0xff]  }
 0x2fb   :  { %3444 = vmatpush3.bf16.msra.mxu0 %v3629_v13  ;;  %v3681_v13 = vld [vmem:[#allocation7 + $0x34c] ss:$12 sps:$4 sm:$0xff]  }
 0x2fc   :  { %1360 = vmatmul.mubr.bf16.vlgmr.msra.gmra.mxu1 %v762_v57  ;;  %3445 = vmatprep.subr.bf16.mxu0 %v3915_v0  ;;  %v3652_v57 = vld [vmem:[#allocation7 + $0x240] ss:$12 sps:$4 sm:$0xff]  }
 0x2fd   :  { %1471 = vmatprep.mubr.f32.mxu1 %v3915_v0 }
 0x2ff   :  { %3446 = vmatpush3.bf16.msra.mxu0 %v3630_v14  ;;  %v3679_v14 = vld [vmem:[#allocation7 + $0x348] ss:$12 sps:$4 sm:$0xff]  }
 0x300   :  { %2307 = vmatprep.subr.bf16.mxu0 %v3660_v59 }
 0x302   :  { %3448 = vmatmul.mubr.bf16.vlgmr.msra.gmra.mxu0 %v4044_v50  ;;  %v3640_v50 = vld [vmem:[#allocation7 + $0x2a0] ss:$12 sps:$4 sm:$0xff]  }
 0x303   :  { %2339 = vmatprep.mubr.bf16.mxu0 %v3918_v10  ;;  %2308 = vmatpush1.bf16.msra.mxu0 %v3658_v60 }
 0x304   :  { %2309 = vmatprep.subr.bf16.mxu0 %v3666_v63 }
 0x307   :  { %2310 = vmatpush1.bf16.msra.mxu0 %v3664_v1 }
 0x308   :  { %2311 = vmatprep.subr.bf16.mxu0 %v3672_v5 }
 0x30b   :  { %2312 = vmatpush1.bf16.msra.mxu0 %v3670_v7  ;;  %v1751_v7 = vsub.s32 4, %v3987_v22 }
 0x30c   :  { %2313 = vmatprep.subr.bf16.mxu0 %v3678_v11 }
 0x30f   :  { %2314 = vmatpush1.bf16.msra.mxu0 %v3676_v12 }
 0x39c   :  { %v1320_v16 = vpop.f32.mrf.mxu1 }
 0x39e   :  { %v1322_v17 = vpop.f32.mrf.mxu1 }
 0x3a0   :  { %v1324_v18 = vpop.f32.mrf.mxu1 }
 0x3a1   :  { %v3687_v18 = vld [vmem:[#allocation7 + $0x334] ss:$12 sps:$4 sm:$0xff]  }
 0x3a2   :  { %v1279_v19 = vpop.f32.mrf.mxu0  ;;  %v1325_v20 = vpop.f32.mrf.mxu1 }
 0x3a3   :  { %v4061_v25 = vadd.f32 %v1320_v16, %v1279_v19  ;;  %v3684_v16 = vld [vmem:[#allocation7 + $0x40c] ss:$12 sps:$4 sm:$0xff]   ;;  %v3685_v19 = vld [vmem:[#allocation7 + $0x330] ss:$12 sps:$4 sm:$0xff]   ;;  %v3690_v20 = vld [vmem:[#allocation7 + $0x3f4] ss:$12 sps:$4 sm:$0xff]  }
 0x3a4   :  { %v1281_v21 = vpop.f32.mrf.mxu0  ;;  %2315 = vmatprep.subr.bf16.mxu0 %v3684_v16 }
 0x3a5   :  { %v4059_v24 = vadd.f32 %v1322_v17, %v1281_v21  ;;  %v1548_v40 = vmul.f32 %v4061_v25, %v4061_v25  ;;  %v3682_v17 = vld [vmem:[#allocation7 + $0x408] ss:$12 sps:$4 sm:$0xff]   ;;  %v3688_v21 = vld [vmem:[#allocation7 + $0x3f0] ss:$12 sps:$4 sm:$0xff]  }
 0x3a6   :  { %v1283_v27 = vpop.f32.mrf.mxu0  ;;  %2316 = vmatpush1.bf16.msra.mxu0 %v3682_v17 }
 0x3a7   :  { %1437 = vmatprep.subr.mxu1 %v4059_v24  ;;  %v1549_v38 = vmul.f32 %v4059_v24, %v4059_v24  ;;  %2317 = vmatprep.subr.bf16.mxu0 %v3690_v20  ;;  %v3691_v27 = vld [vmem:[#allocation7 + $0x318] ss:$12 sps:$4 sm:$0xff]   ;;  %v1766_v20 = vsub.s32 5, %v3987_v22 }
 0x3a8   :  { %v1284_v28 = vpop.f32.mrf.mxu0  ;;  %1438 = vmatpush1.msra.mxu1 %v4061_v25 }
 0x3a9   :  { %3187 = vmatmul.mubr.msk.f32.vlgmr.msra.gmra.mxu1 %vm93_vm1, %v3917_v3  ;;  %3451 = vmatprep.subr.mxu1 %v3915_v0  ;;  %v3693_v28 = vld [vmem:[#allocation7 + $0x31c] ss:$12 sps:$4 sm:$0xff]  }
 0x3aa   :  { %3453 = vmatprep.mubr.msk.f32.mxu1 %vm3916_vm0, %v3915_v0  ;;  %2318 = vmatpush1.bf16.msra.mxu0 %v3688_v21 }
 0x3bc   :  { %v3318_v10 = vpop.f32.mrf.mxu1 }
 0x3be   :  { %v3319_v29 = vpop.f32.mrf.mxu1 }
 0x3bf   :  { %v3320_v31 = vadd.f32 %v3319_v29, %v3318_v10  ;;  %v3694_v10 = vld [vmem:[#allocation7 + $0x3d8] ss:$12 sps:$4 sm:$0xff]   ;;  %v3696_v29 = vld [vmem:[#allocation7 + $0x3dc] ss:$12 sps:$4 sm:$0xff]  }
 0x3c0   :  { %v3321_v30 = vpop.f32.mrf.mxu1  ;;  %2319 = vmatprep.subr.bf16.mxu0 %v3696_v29 }
 0x3c1   :  { %v3699_v30 = vld [vmem:[#allocation7 + $0x304] ss:$12 sps:$4 sm:$0xff]   ;;  %2320 = vmatpush1.bf16.msra.mxu0 %v3694_v10 }
 0x3c2   :  { %v3322_v32 = vpop.f32.mrf.mxu1  ;;  %v1401_v33 = vpop.f32.mrf.mxu0 }
 0x3c3   :  { %v4070_v34 = vadd.f32 %v3320_v31, %v1401_v33  ;;  %v3702_v31 = vld [vmem:[#allocation7 + $0x3c4] ss:$12 sps:$4 sm:$0xff]   ;;  %v3697_v32 = vld [vmem:[#allocation7 + $0x300] ss:$12 sps:$4 sm:$0xff]  }
 0x3c4   :  { %v3449_v35 = vpop.f32.mrf.mxu0  ;;  %v3700_v33 = vld [vmem:[#allocation7 + $0x3c0] ss:$12 sps:$4 sm:$0xff]   ;;  %2321 = vmatprep.subr.bf16.mxu0 %v3702_v31 }
 0x3c5   :  { %3452 = vmatpush3.msra.mxu1 %v4070_v34  ;;  %v1550_v44 = vmul.f32 %v4070_v34, %v4070_v34  ;;  %2322 = vmatpush1.bf16.msra.mxu0 %v3700_v33  ;;  %v3703_v35 = vld [vmem:[#allocation7 + $0x3b0] ss:$12 sps:$4 sm:$0xff]  }
 0x3c6   :  { %v1404_v41 = vpop.f32.mrf.mxu0  ;;  %3454 = vmatmul.mubr.msk.f32.vlgmr.msra.gmra.mxu1 %vm93_vm1, %v3917_v3  ;;  %1581 = vmatprep.subr.mxu1 %v1549_v38 }
 0x3c7   :  { %1582 = vmatpush1.msra.mxu1 %v1548_v40  ;;  %1615 = vmatprep.mubr.f32.mxu1 %v3915_v0 }
 0x3c8   :  { %v3450_v42 = vpop.f32.mrf.mxu0  ;;  %3456 = vmatprep.subr.mxu1 %v3915_v0  ;;  %3337 = vmatprep.subr.bf16.mxu0 %v3703_v35 }
 0x3ca   :  { %3189 = vmatmul.mubr.msk.f32.vlgmr.msra.gmra.mxu1 %vm93_vm1, %v3917_v3 }
 0x3cb   :  { %3457 = vmatpush3.msra.mxu1 %v1550_v44  ;;  %3458 = vmatprep.mubr.msk.f32.mxu1 %vm3916_vm0, %v3915_v0 }
 0x3cc   :  { %2266 = vmatprep.subr.bf16.mxu1 %v3633_v43 }
 0x3ce   :  { %3459 = vmatmul.mubr.msk.f32.vlgmr.msra.gmra.mxu1 %vm93_vm1, %v3917_v3 }
 0x3cf   :  { %2267 = vmatpush1.bf16.msra.mxu1 %v3631_v45 }
 0x3d0   :  { %2268 = vmatprep.subr.bf16.mxu1 %v3636_v46 }
 0x3d3   :  { %2269 = vmatpush1.bf16.msra.mxu1 %v3634_v47 }
 0x3d4   :  { %2270 = vmatprep.subr.bf16.mxu1 %v3639_v48 }
 0x3d7   :  { %2271 = vmatpush1.bf16.msra.mxu1 %v3637_v49 }
 0x3d8   :  { %2272 = vmatprep.subr.bf16.mxu1 %v3642_v37 }
 0x3db   :  { %2273 = vmatpush1.bf16.msra.mxu1 %v3640_v50 }
 0x3dc   :  { %2274 = vmatprep.subr.bf16.mxu1 %v3645_v51 }
 0x3df   :  { %2275 = vmatpush1.bf16.msra.mxu1 %v3643_v52 }
 0x3e0   :  { %2276 = vmatprep.subr.bf16.mxu1 %v3648_v53 }
 0x3e3   :  { %2277 = vmatpush1.bf16.msra.mxu1 %v3646_v54 }
 0x3e4   :  { %2278 = vmatprep.subr.bf16.mxu1 %v3651_v55 }
 0x3e7   :  { %2279 = vmatpush1.bf16.msra.mxu1 %v3649_v36 }
 0x3e8   :  { %2280 = vmatprep.subr.bf16.mxu1 %v3654_v56 }
 0x3eb   :  { %2281 = vmatpush1.bf16.msra.mxu1 %v3652_v57 }
 0x3ec   :  { %2282 = vmatprep.subr.bf16.mxu1 %v3657_v39 }
 0x3ef   :  { %2283 = vmatpush2.bf16.msra.mxu1 %v3655_v58 }
 0x3f0   :  { %2284 = vmatprep.subr.bf16.mxu1 %v3663_v61 }
 0x3f3   :  { %2285 = vmatpush2.bf16.msra.mxu1 %v3661_v62 }
 0x3f4   :  { %2286 = vmatprep.subr.bf16.mxu1 %v3669_v2 }
 0x3f7   :  { %2287 = vmatpush2.bf16.msra.mxu1 %v3667_v4 }
 0x3f8   :  { %2288 = vmatprep.subr.bf16.mxu1 %v3675_v8 }
 0x3fb   :  { %2289 = vmatpush2.bf16.msra.mxu1 %v3673_v9 }
 0x3fc   :  { %2290 = vmatprep.subr.bf16.mxu1 %v3681_v13 }
 0x3ff   :  { %2291 = vmatpush2.bf16.msra.mxu1 %v3679_v14 }
 0x400   :  { %2292 = vmatprep.subr.bf16.mxu1 %v3687_v18 }
 0x403   :  { %2293 = vmatpush2.bf16.msra.mxu1 %v3685_v19 }
 0x404   :  { %2294 = vmatprep.subr.bf16.mxu1 %v3693_v28 }
 0x407   :  { %2295 = vmatpush2.bf16.msra.mxu1 %v3691_v27 }
 0x408   :  { %2296 = vmatprep.subr.bf16.mxu1 %v3699_v30 }
 0x40b   :  { %2297 = vmatpush2.bf16.msra.mxu1 %v3697_v32 }
 0x40c   :  { %3461 = vmatprep.subr.bf16.mxu1 %v3915_v0 }
 0x469   :  { %v1473_v38 = vpop.f32.mrf.mxu1 }
 0x46a   :  { %v1692_v42 = vmul.f32 0.125, %v1473_v38 }
 0x46b   :  { %v1475_v40 = vpop.f32.mrf.mxu1 }
 0x46c   :  { %v1693_v44 = vmul.f32 0.125, %v1475_v40  ;;  %v1698_v46 = vmul.f32 %v1692_v42, %v1692_v42 }
 0x46e   :  { %v1699_v50 = vmul.f32 %v1693_v44, %v1693_v44 }
 0x486   :  { %v1544_v41 = vpop.f32.mrf.mxu1 }
 0x487   :  { %v1694_v47 = vmul.f32 0.125, %v1544_v41 }
 0x488   :  { %v3455_v43 = vpop.f32.mrf.mxu1 }
 0x489   :  { %v1700_v53 = vmul.f32 %v1694_v47, %v1694_v47 }
 0x48a   :  { %v1617_v45 = vpop.f32.mrf.mxu1 }
 0x48b   :  { %v1695_v48 = vmul.f32 0.125, %v1617_v45 }
 0x48c   :  { %v1619_v49 = vpop.f32.mrf.mxu1 }
 0x48d   :  { %v1701_v37 = vsub.f32 %v1695_v48, %v1698_v46  ;;  %v1696_v51 = vmul.f32 0.125, %v1619_v49 }
 0x48e   :  { %v1688_v52 = vpop.f32.mrf.mxu1 }
 0x48f   :  { %v1704_v54 = vmax.f32 %v1701_v37, 0.0  ;;  %v1702_v55 = vsub.f32 %v1696_v51, %v1699_v50  ;;  %v1697_v36 = vmul.f32 0.125, %v1688_v52  ;;  %v3705_v50 = vld [vmem:[#allocation7 + $0x2f0] ss:$12 sps:$4 sm:$0xff]   ;;  %v3706_v51 = vld [vmem:[#allocation7 + $0x398] ss:$12 sps:$4 sm:$0xff]  }
 0x490   :  { %v3460_v56 = vpop.f32.mrf.mxu1  ;;  %v3708_v52 = vld [vmem:[#allocation7 + $0x2d8] ss:$12 sps:$4 sm:$0xff]  }
 0x491   :  { %v1707_v57 = vadd.f32 1e-05, %v1704_v54  ;;  %v1705_v39 = vmax.f32 %v1702_v55, 0.0  ;;  %v1703_v58 = vsub.f32 %v1697_v36, %v1700_v53  ;;  %v3710_v53 = vld [vmem:[#allocation7 + $0x440] ss:$12 sps:$4 sm:$0xff]  }
 0x492   :  { %v3711_v54 = vld [vmem:[#allocation7 + $0x2c0] ss:$12 sps:$4 sm:$0xff]   ;;  %v3712_v55 = vld [vmem:[#allocation7 + $0x368] ss:$12 sps:$4 sm:$0xff]  }
 0x493   :  { %3759 = vrsqrt.f32 %v1707_v57  ;;  %v1708_v59 = vadd.f32 1e-05, %v1705_v39  ;;  %v1706_v60 = vmax.f32 %v1703_v58, 0.0  ;;  %v3713_v36 = vld [vmem:[#allocation7 + $0x428] ss:$12 sps:$4 sm:$0xff]  }
 0x494   :  { %v3714_v56 = vld [vmem:[#allocation7 + $0x2a8] ss:$12 sps:$4 sm:$0xff]   ;;  %v3715_v57 = vld [vmem:[#allocation7 + $0x350] ss:$12 sps:$4 sm:$0xff]  }
 0x495   :  { %3761 = vrsqrt.f32 %v1708_v59  ;;  %v1709_v61 = vadd.f32 1e-05, %v1706_v60  ;;  %v3716_v39 = vld [vmem:[#allocation7 + $0x410] ss:$12 sps:$4 sm:$0xff]   ;;  %v3718_v59 = vld [vmem:[#allocation7 + $0x338] ss:$12 sps:$4 sm:$0xff]  }
 0x496   :  { %v3717_v58 = vld [vmem:[#allocation7 + $0x290] ss:$12 sps:$4 sm:$0xff]   ;;  %v3719_v60 = vld [vmem:[#allocation7 + $0x3f8] ss:$12 sps:$4 sm:$0xff]  }
 0x497   :  { %3763 = vrsqrt.f32 %v1709_v61  ;;  %v3720_v61 = vld [vmem:[#allocation7 + $0x278] ss:$12 sps:$4 sm:$0xff]  }
 0x4a0   :  { %v3760_v62 = vpop.eup %3759 }
 0x4a1   :  { %v1716_v63 = vrot.slane %v3760_v62, 4  ;;  %v3721_v62 = vld [vmem:[#allocation7 + $0x320] ss:$12 sps:$4 sm:$0xff]  }
 0x4a2   :  { %v3762_v1 = vpop.eup %3761 }
 0x4a3   :  { %v1722_v2 = vmul.f32 %v1716_v63, %v3989_v23  ;;  %v1717_v4 = vrot.slane %v3762_v1, 4  ;;  %v3722_v63 = vld [vmem:[#allocation7 + $0x3e0] ss:$12 sps:$4 sm:$0xff]  }
 0x4a4   :  { %v3764_v5 = vpop.eup %3763  ;;  %v3723_v1 = vld [vmem:[#allocation7 + $0x260] ss:$12 sps:$4 sm:$0xff]  }
 0x4a5   :  { %v1728_v8 = vrot.slane %v1722_v2, 4  ;;  %v1723_v9 = vmul.f32 %v1717_v4, %v4033_v15  ;;  %v1718_v11 = vrot.slane %v3764_v5, 4  ;;  %v1752_v16 = vrot.slane %v1722_v2, %v1751_v7  ;;  %v3724_v2 = vld [vmem:[#allocation7 + $0x308] ss:$12 sps:$4 sm:$0xff]  }
 0x4a6   :  { %v3725_v4 = vld [vmem:[#allocation7 + $0x3c8] ss:$12 sps:$4 sm:$0xff]  }
 0x4a7   :  { %v1734_v12 = vmul.f32 %v1728_v8, %v1692_v42  ;;  %v1729_v13 = vrot.slane %v1723_v9, 4  ;;  %v1724_v14 = vmul.f32 %v1718_v11, %v4029_v6  ;;  %v1756_v28 = vrot.slane %v1723_v9, %v1751_v7  ;;  %v3726_v5 = vld [vmem:[#allocation7 + $0x248] ss:$12 sps:$4 sm:$0xff]  }
 0x4a8   :  { %v1761_v29 = vmul.f32 %v1752_v16, %v4061_v25  ;;  %v3704_v25 = vld [vmem:[#allocation7 + $0x470] ss:$12 sps:$4 sm:$0xff]  }
 0x4a9   :  { %v1740_v17 = vrot.slane %v1734_v12, 3  ;;  %v1730_v18 = vrot.slane %v1724_v14, 4  ;;  %v1735_v19 = vmul.f32 %v1729_v13, %v1693_v44  ;;  %v1760_v31 = vrot.slane %v1724_v14, %v1751_v7 }
 0x4aa   :  { %v1762_v35 = vmul.f32 %v1756_v28, %v4059_v24  ;;  %v3707_v24 = vld [vmem:[#allocation7 + $0x458] ss:$12 sps:$4 sm:$0xff]  }
 0x4ab   :  { %v1736_v21 = vmul.f32 %v1730_v18, %v1694_v47  ;;  %v1741_v27 = vrot.slane %v1735_v19, 3  ;;  %v1746_v10 = vsub.f32 %v3989_v23, %v1740_v17  ;;  %v1763_v43 = vmul.f32 %v1760_v31, %v4070_v34  ;;  %v3709_v34 = vld [vmem:[#allocation7 + $0x380] ss:$12 sps:$4 sm:$0xff]  }
 0x4ad   :  { %v1742_v30 = vrot.slane %v1736_v21, 3  ;;  %v1747_v32 = vsub.f32 %v4033_v15, %v1741_v27  ;;  %v1767_v33 = vrot.slane %v1746_v10, %v1766_v20 }
 0x4af   :  { %v1771_v38 = vrot.slane %v1747_v32, %v1766_v20  ;;  %v1776_v40 = vadd.f32 %v1767_v33, %v1761_v29  ;;  %v1748_v41 = vsub.f32 %v4029_v6, %v1742_v30 }
 0x4b1   :  { %v1777_v42 = vadd.f32 %v1771_v38, %v1762_v35  ;;  %v1775_v44 = vrot.slane %v1748_v41, %v1766_v20  ;;  %v1779_v45 = vmax.f32 %v1776_v40, 0.0  ;;  %v3727_v40 = vld [vmem:[#allocation8 + $0x78] sm:$0xff]  }
 0x4b2   :  { %v3728_v41 = vld [vmem:[#allocation8 + $0x38] sm:$0xff]  }
 0x4b3   :  { %v1780_v46 = vmax.f32 %v1777_v42, 0.0  ;;  %v1778_v23 = vadd.f32 %v1775_v44, %v1763_v43  ;;  %v1782_v49 = vpack.c.bf16 %v1779_v45, %v1779_v45  ;;  %v3729_v42 = vld [vmem:[#allocation8 + $0xb8] sm:$0xff]   ;;  %v3730_v43 = vld [vmem:[#allocation8 + $0x70] sm:$0xff]  }
 0x4b4   :  { %v3731_v44 = vld [vmem:[#allocation8 + $0x30] sm:$0xff]  }
 0x4b5   :  { %v1783_v47 = vpack.c.bf16 %v1780_v46, %v1780_v46  ;;  %v1781_v48 = vmax.f32 %v1778_v23, 0.0  ;;  %v3732_v45 = vld [vmem:[#allocation8 + $0xb0] sm:$0xff]   ;;  %v3733_v46 = vld [vmem:[#allocation8 + $0x68] sm:$0xff]  }
 0x4b6   :  { %v3734_v23 = vld [vmem:[#allocation8 + $0x28] sm:$0xff]  }
 0x4b7   :  { %2298 = vmatprep.mubr.bf16.mxu1 %v1783_v47  ;;  %v1784_v37 = vpack.c.bf16 %v1781_v48, %v1781_v48  ;;  %v3738_v48 = vld [vmem:[#allocation8 + $0xa0] sm:$0xff]  }
 0x4b8   :  { %2299 = vmatmul.mubr.bf16.vlgmr.msra.gmra.mxu1 %v1782_v49 }
 0x4b9   :  { %3462 = vmatpush3.bf16.msra.mxu1 %v3704_v25  ;;  %2340 = vmatmul.mubr.bf16.vlgmr.msra.gmra.mxu0 %v1784_v37  ;;  %v3737_v25 = vld [vmem:[#allocation8 + $0x20] sm:$0xff]  }
 0x4ba   :  { %3338 = vmatpush3.bf16.msra.mxu0 %v3705_v50  ;;  %2380 = vmatprep.mubr.bf16.mxu0 %v1783_v47  ;;  %v3736_v47 = vld [vmem:[#allocation8 + $0x60] sm:$0xff]   ;;  %v3740_v50 = vld [vmem:[#allocation8 + $0x18] sm:$0xff]  }
 0x4bb   :  { %3463 = vmatprep.subr.bf16.mxu1 %v3915_v0  ;;  %3339 = vmatprep.subr.bf16.mxu0 %v3706_v51  ;;  %v3742_v51 = vld [vmem:[#allocation8 + $0x50] sm:$0xff]  }
 0x4bc   :  { %3477 = vmatprep.mubr.msk.bf16.mxu1 %vm3916_vm0, %v3915_v0 }
 0x4bd   :  { %3464 = vmatpush3.bf16.msra.mxu1 %v3707_v24  ;;  %v3743_v24 = vld [vmem:[#allocation8 + $0x10] sm:$0xff]  }
 0x4be   :  { %3340 = vmatpush3.bf16.msra.mxu0 %v3708_v52  ;;  %3465 = vmatprep.subr.bf16.mxu1 %v3915_v0  ;;  %v3744_v52 = vld [vmem:[#allocation8 + $0x90] sm:$0xff]  }
 0x4bf   :  { %3341 = vmatprep.subr.bf16.mxu0 %v3709_v34  ;;  %v3745_v34 = vld [vmem:[#allocation8 + $0x48] sm:$0xff]  }
 0x4c1   :  { %3466 = vmatpush3.bf16.msra.mxu1 %v3710_v53  ;;  %v3746_v53 = vld [vmem:[#allocation8 + $0x8] sm:$0xff]  }
 0x4c2   :  { %3342 = vmatpush3.bf16.msra.mxu0 %v3711_v54  ;;  %3467 = vmatprep.subr.bf16.mxu1 %v3915_v0  ;;  %v3747_v54 = vld [vmem:[#allocation8 + $0x88] sm:$0xff]  }
 0x4c3   :  { %3343 = vmatprep.subr.bf16.mxu0 %v3712_v55  ;;  %v3748_v55 = vld [vmem:[#allocation8 + $0x40] sm:$0xff]  }
 0x4c5   :  { %3468 = vmatpush3.bf16.msra.mxu1 %v3713_v36  ;;  %v3749_v36 = vld [vmem:[#allocation8] sm:$0xff]  }
 0x4c6   :  { %3344 = vmatpush3.bf16.msra.mxu0 %v3714_v56  ;;  %3469 = vmatprep.subr.bf16.mxu1 %v3915_v0  ;;  %v3750_v56 = vld [vmem:[#allocation8 + $0x80] sm:$0xff]  }
 0x4c7   :  { %3345 = vmatprep.subr.bf16.mxu0 %v3715_v57 }
 0x4c9   :  { %3470 = vmatpush3.bf16.msra.mxu1 %v3716_v39 }
 0x4ca   :  { %3346 = vmatpush3.bf16.msra.mxu0 %v3717_v58  ;;  %3471 = vmatprep.subr.bf16.mxu1 %v3915_v0 }
 0x4cb   :  { %3347 = vmatprep.subr.bf16.mxu0 %v3718_v59 }
 0x4cd   :  { %3472 = vmatpush3.bf16.msra.mxu1 %v3719_v60 }
 0x4ce   :  { %3348 = vmatpush3.bf16.msra.mxu0 %v3720_v61  ;;  %3473 = vmatprep.subr.bf16.mxu1 %v3915_v0 }
 0x4cf   :  { %3349 = vmatprep.subr.bf16.mxu0 %v3721_v62 }
 0x4d1   :  { %3474 = vmatpush3.bf16.msra.mxu1 %v3722_v63 }
 0x4d2   :  { %3350 = vmatpush3.bf16.msra.mxu0 %v3723_v1  ;;  %3475 = vmatprep.subr.bf16.mxu1 %v3915_v0 }
 0x4d3   :  { %3351 = vmatprep.subr.bf16.mxu0 %v3724_v2 }
 0x4d5   :  { %3476 = vmatpush3.bf16.msra.mxu1 %v3725_v4 }
 0x4d6   :  { %3352 = vmatpush3.bf16.msra.mxu0 %v3726_v5  ;;  %3491 = vmatprep.subr.bf16.mxu1 %v3915_v0 }
 0x4d8   :  { %3478 = vmatmul.mubr.bf16.vlgmr.msra.gmra.mxu1 %v1784_v37  ;;  %v3741_v37 = vld [vmem:[#allocation8 + $0x98] sm:$0xff]  }
 0x4d9   :  { %2381 = vmatmul.mubr.bf16.vlgmr.msra.gmra.mxu0 %v1782_v49  ;;  %3507 = vmatprep.mubr.msk.bf16.mxu1 %vm3916_vm0, %v3915_v0  ;;  %v3739_v49 = vld [vmem:[#allocation8 + $0x58] sm:$0xff]  }
 0x4da   :  { %2492 = vmatprep.mubr.f32.mxu0 %v3915_v0  ;;  %3492 = vmatpush3.bf16.msra.mxu1 %v3729_v42 }
 0x4db   :  { %3493 = vmatprep.subr.bf16.mxu1 %v3915_v0 }
 0x4de   :  { %3494 = vmatpush3.bf16.msra.mxu1 %v3732_v45 }
 0x4df   :  { %3495 = vmatprep.subr.bf16.mxu1 %v3915_v0 }
 0x578   :  { %v2300_v7 = vpop.f32.mrf.mxu1 }
 0x579   :  { %v2341_v8 = vpop.f32.mrf.mxu0 }
 0x57a   :  { %v2302_v9 = vpop.f32.mrf.mxu1  ;;  %v4116_v14 = vadd.f32 %v2341_v8, %v2300_v7 }
 0x57b   :  { %v2343_v11 = vpop.f32.mrf.mxu0 }
 0x57c   :  { %v4114_v12 = vadd.f32 %v2343_v11, %v2302_v9  ;;  %v2304_v13 = vpop.f32.mrf.mxu1  ;;  %v2569_v35 = vmul.f32 %v4116_v14, %v4116_v14 }
 0x57d   :  { %v2345_v16 = vpop.f32.mrf.mxu0 }
 0x57e   :  { %v2305_v17 = vpop.f32.mrf.mxu1  ;;  %2458 = vmatprep.subr.mxu0 %v4114_v12  ;;  %v2570_v33 = vmul.f32 %v4114_v12, %v4114_v12 }
 0x57f   :  { %v2346_v18 = vpop.f32.mrf.mxu0  ;;  %2459 = vmatpush1.msra.mxu0 %v4116_v14 }
 0x580   :  { %3263 = vmatmul.mubr.msk.f32.vlgmr.msra.gmra.mxu0 %vm93_vm1, %v3917_v3  ;;  %3481 = vmatprep.subr.mxu0 %v3915_v0 }
 0x581   :  { %3483 = vmatprep.mubr.msk.f32.mxu0 %vm3916_vm0, %v3915_v0 }
 0x598   :  { %v2422_v19 = vpop.f32.mrf.mxu1 }
 0x599   :  { %v3353_v20 = vpop.f32.mrf.mxu0 }
 0x59a   :  { %v3479_v21 = vpop.f32.mrf.mxu1 }
 0x59b   :  { %v3354_v27 = vpop.f32.mrf.mxu0 }
 0x59c   :  { %v3355_v28 = vadd.f32 %v3354_v27, %v3353_v20  ;;  %v2425_v10 = vpop.f32.mrf.mxu1 }
 0x59d   :  { %v3356_v29 = vpop.f32.mrf.mxu0 }
 0x59e   :  { %v4125_v30 = vadd.f32 %v3355_v28, %v2422_v19  ;;  %v3480_v31 = vpop.f32.mrf.mxu1 }
 0x59f   :  { %v3357_v32 = vpop.f32.mrf.mxu0 }
 0x5a0   :  { %3482 = vmatpush3.msra.mxu0 %v4125_v30  ;;  %v2571_v38 = vmul.f32 %v4125_v30, %v4125_v30  ;;  %v3773_v32 = vld [vmem:[#allocation10] sm:$0xff] }
 0x5a1   :  { %3484 = vmatmul.mubr.msk.f32.vlgmr.msra.gmra.mxu0 %vm93_vm1, %v3917_v3  ;;  %2602 = vmatprep.subr.mxu0 %v2570_v33 }
 0x5a2   :  { %2603 = vmatpush1.msra.mxu0 %v2569_v35  ;;  %2636 = vmatprep.mubr.f32.mxu0 %v3915_v0 }
 0x5a3   :  { %3486 = vmatprep.subr.mxu0 %v3915_v0 }
 0x5a5   :  { %3265 = vmatmul.mubr.msk.f32.vlgmr.msra.gmra.mxu0 %vm93_vm1, %v3917_v3 }
 0x5a6   :  { %3487 = vmatpush3.msra.mxu0 %v2571_v38  ;;  %3488 = vmatprep.mubr.msk.f32.mxu0 %vm3916_vm0, %v3915_v0 }
 0x5a7   :  { %3372 = vmatprep.subr.bf16.mxu0 %v3727_v40  ;;  %v2772_v40 = vsub.s32 6, %v3987_v22 }
 0x5a9   :  { %3489 = vmatmul.mubr.msk.f32.vlgmr.msra.gmra.mxu0 %vm93_vm1, %v3917_v3  ;;  %v3735_v3 = vld [vmem:[#allocation8 + $0xa8] sm:$0xff]  }
 0x5aa   :  { %3373 = vmatpush3.bf16.msra.mxu0 %v3728_v41  ;;  %3496 = vmatpush3.bf16.msra.mxu1 %v3735_v3 }
 0x5ab   :  { %3374 = vmatprep.subr.bf16.mxu0 %v3730_v43  ;;  %3497 = vmatprep.subr.bf16.mxu1 %v3915_v0 }
 0x5ae   :  { %3375 = vmatpush3.bf16.msra.mxu0 %v3731_v44  ;;  %3498 = vmatpush3.bf16.msra.mxu1 %v3738_v48  ;;  %v2787_v48 = vsub.s32 7, %v3987_v22 }
 0x5af   :  { %3376 = vmatprep.subr.bf16.mxu0 %v3733_v46  ;;  %3499 = vmatprep.subr.bf16.mxu1 %v3915_v0 }
 0x5b2   :  { %3377 = vmatpush3.bf16.msra.mxu0 %v3734_v23  ;;  %3500 = vmatpush3.bf16.msra.mxu1 %v3741_v37 }
 0x5b3   :  { %3378 = vmatprep.subr.bf16.mxu0 %v3736_v47  ;;  %3501 = vmatprep.subr.bf16.mxu1 %v3915_v0 }
 0x5b6   :  { %3379 = vmatpush3.bf16.msra.mxu0 %v3737_v25  ;;  %3502 = vmatpush3.bf16.msra.mxu1 %v3744_v52 }
 0x5b7   :  { %3380 = vmatprep.subr.bf16.mxu0 %v3739_v49  ;;  %3503 = vmatprep.subr.bf16.mxu1 %v3915_v0 }
 0x5ba   :  { %3381 = vmatpush3.bf16.msra.mxu0 %v3740_v50  ;;  %3504 = vmatpush3.bf16.msra.mxu1 %v3747_v54 }
 0x5bb   :  { %3382 = vmatprep.subr.bf16.mxu0 %v3742_v51  ;;  %3505 = vmatprep.subr.bf16.mxu1 %v3915_v0 }
 0x5be   :  { %3383 = vmatpush3.bf16.msra.mxu0 %v3743_v24  ;;  %3506 = vmatpush3.bf16.msra.mxu1 %v3750_v56  ;;  %v3775_v56 = vld [vmem:[#allocation10 + $0x10] sm:$0xff] }
 0x5bf   :  { %3384 = vmatprep.subr.bf16.mxu0 %v3745_v34 }
 0x5c2   :  { %3385 = vmatpush3.bf16.msra.mxu0 %v3746_v53 }
 0x5c3   :  { %3386 = vmatprep.subr.bf16.mxu0 %v3748_v55 }
 0x5c6   :  { %3387 = vmatpush3.bf16.msra.mxu0 %v3749_v36 }
 0x640   :  { %v2494_v57 = vpop.f32.mrf.mxu0 }
 0x641   :  { %v2713_v59 = vmul.f32 0.125, %v2494_v57 }
 0x642   :  { %v2496_v39 = vpop.f32.mrf.mxu0 }
 0x643   :  { %v2714_v61 = vmul.f32 0.125, %v2496_v39  ;;  %v2719_v63 = vmul.f32 %v2713_v59, %v2713_v59 }
 0x645   :  { %v2720_v5 = vmul.f32 %v2714_v61, %v2714_v61 }
 0x661   :  { %v2565_v58 = vpop.f32.mrf.mxu0 }
 0x662   :  { %v2715_v1 = vmul.f32 0.125, %v2565_v58 }
 0x663   :  { %v3485_v60 = vpop.f32.mrf.mxu0 }
 0x664   :  { %v2721_v11 = vmul.f32 %v2715_v1, %v2715_v1 }
 0x665   :  { %v2638_v62 = vpop.f32.mrf.mxu0 }
 0x666   :  { %v2716_v2 = vmul.f32 0.125, %v2638_v62 }
 0x667   :  { %v2640_v4 = vpop.f32.mrf.mxu0 }
 0x668   :  { %v2722_v7 = vsub.f32 %v2716_v2, %v2719_v63  ;;  %v2717_v8 = vmul.f32 0.125, %v2640_v4  ;;  %v91_v4 = vld [vmem:[#allocation10 + $0x18] sm:$0xff] }
 0x669   :  { %v2709_v9 = vpop.f32.mrf.mxu0 }
 0x66a   :  { %v2725_v13 = vmax.f32 %v2722_v7, 0.0  ;;  %v2723_v0 = vsub.f32 %v2717_v8, %v2720_v5  ;;  %v2718_v16 = vmul.f32 0.125, %v2709_v9  ;;  %v2857_v7 = vrot.slane %v91_v4, %v253_v26 }
 0x66b   :  { %v3490_v17 = vpop.f32.mrf.mxu0 }
 0x66c   :  { %v2728_v18 = vadd.f32 1e-05, %v2725_v13  ;;  %v2726_v19 = vmax.f32 %v2723_v0, 0.0  ;;  %v2724_v20 = vsub.f32 %v2718_v16, %v2721_v11 }
 0x66e   :  { %3765 = vrsqrt.f32 %v2728_v18  ;;  %v2729_v21 = vadd.f32 1e-05, %v2726_v19  ;;  %v2727_v27 = vmax.f32 %v2724_v20, 0.0 }
 0x670   :  { %3767 = vrsqrt.f32 %v2729_v21  ;;  %v2730_v28 = vadd.f32 1e-05, %v2727_v27 }
 0x672   :  { %3769 = vrsqrt.f32 %v2730_v28 }
 0x67b   :  { %v3766_v10 = vpop.eup %3765 }
 0x67c   :  { %v2737_v29 = vrot.slane %v3766_v10, 2 }
 0x67d   :  { %v3768_v31 = vpop.eup %3767 }
 0x67e   :  { %v2743_v33 = vmul.f32 %v3773_v32, %v2737_v29  ;;  %v2738_v35 = vrot.slane %v3768_v31, 2 }
 0x67f   :  { %v3770_v38 = vpop.eup %3769 }
 0x680   :  { %v2749_v41 = vrot.slane %v2743_v33, 6  ;;  %v2744_v42 = vmul.f32 %v2738_v35, %v4033_v15  ;;  %v2739_v43 = vrot.slane %v3770_v38, 2  ;;  %v2773_v23 = vrot.slane %v2743_v33, %v2772_v40  ;;  %v3774_v15 = vld [vmem:[#allocation10 + $0x8] sm:$0xff] }
 0x682   :  { %v2755_v44 = vmul.f32 %v2749_v41, %v2713_v59  ;;  %v2750_v45 = vrot.slane %v2744_v42, 6  ;;  %v2745_v46 = vmul.f32 %v2739_v43, %v4029_v6  ;;  %v2777_v37 = vrot.slane %v2744_v42, %v2772_v40 }
 0x683   :  { %v2782_v24 = vmul.f32 %v2773_v23, %v4116_v14 }
 0x684   :  { %v2761_v3 = vrot.slane %v2755_v44, 1  ;;  %v2751_v47 = vrot.slane %v2745_v46, 6  ;;  %v2756_v25 = vmul.f32 %v2750_v45, %v2714_v61  ;;  %v2781_v34 = vrot.slane %v2745_v46, %v2772_v40 }
 0x685   :  { %v2783_v55 = vmul.f32 %v2777_v37, %v4114_v12 }
 0x686   :  { %v2757_v49 = vmul.f32 %v2751_v47, %v2715_v1  ;;  %v2762_v50 = vrot.slane %v2756_v25, 1  ;;  %v2767_v51 = vsub.f32 %v3773_v32, %v2761_v3  ;;  %v2784_v58 = vmul.f32 %v2781_v34, %v4125_v30 }
 0x688   :  { %v2763_v52 = vrot.slane %v2757_v49, 1  ;;  %v2768_v53 = vsub.f32 %v3774_v15, %v2762_v50  ;;  %v2788_v54 = vrot.slane %v2767_v51, %v2787_v48 }
 0x68a   :  { %v2792_v6 = vrot.slane %v2768_v53, %v2787_v48  ;;  %v2797_v36 = vadd.f32 %v2788_v54, %v2782_v24  ;;  %v2769_v57 = vsub.f32 %v3775_v56, %v2763_v52 }
 0x68c   :  { %v2798_v39 = vadd.f32 %v2792_v6, %v2783_v55  ;;  %v2796_v59 = vrot.slane %v2769_v57, %v2787_v48  ;;  %v2800_v60 = vmax.f32 %v2797_v36, 0.0 }
 0x68e   :  { %v2801_v61 = vmax.f32 %v2798_v39, 0.0  ;;  %v2799_v62 = vadd.f32 %v2796_v59, %v2784_v58  ;;  %v2803_v1 = vpack.c.bf16 %v2800_v60, %v2800_v60 }
 0x690   :  { %v2804_v63 = vpack.c.bf16 %v2801_v61, %v2801_v61  ;;  %v2802_v14 = vmax.f32 %v2799_v62, 0.0 }
 0x692   :  { %3034 = vmatprep.mubr.bf16.mxu0 %v2804_v63  ;;  %v2805_v2 = vpack.c.bf16 %v2802_v14, %v2802_v14 }
 0x693   :  { %3035 = vmatmul.mubr.bf16.vlgmr.msra.gmra.mxu0 %v2803_v1 }
 0x694   :  { %3508 = vmatmul.mubr.bf16.vlgmr.msra.gmra.mxu1 %v2805_v2 }
 0x753   :  { %v3388_v12 = vpop.f32.mrf.mxu0 }
 0x754   :  { %v3076_v5 = vpop.f32.mrf.mxu1 }
 0x755   :  { %v3389_v8 = vpop.f32.mrf.mxu0 }
 0x756   :  { %v3390_v9 = vadd.f32 %v3389_v8, %v3388_v12  ;;  %v3509_v30 = vpop.f32.mrf.mxu1 }
 0x757   :  { %v3391_v11 = vpop.f32.mrf.mxu0 }
 0x758   :  { %v3037_v13 = vadd.f32 %v3390_v9, %v2857_v7  ;;  %v3079_v0 = vpop.f32.mrf.mxu1 }
 0x759   :  { %v3392_v16 = vpop.f32.mrf.mxu0 }
 0x75a   :  { %v3077_v17 = vadd.f32 %v3076_v5, %v3037_v13  ;;  %v3510_v18 = vpop.f32.mrf.mxu1 }
 0x75c   :  { %3771 = vtanh.f32 %v3077_v17 }
 0x769   :  { %v3772_v19 = vpop.eup %3771 }
 0x76a   :  { %3083 = vst [vmem:[#allocation11] sm:$0xff] %v3772_v19 }
 0x76b   :  { %3887 = shalt.err (!%p3884_p1)
}
 0x76c   :  { %3093 = dma.vmem_to_hbm [thread:$0]  %s3091_s4, 128, %s4168_s5, [#allocation4]  }
 0x76d   :  { %3902 = dma.done.wait [#allocation4], 128  }
 0x76e   :  { %3903 = vsyncadd [#allocation4], 4294967168 }
 0x76f   :  { %3097 = vsyncpa [#allocation3], 1 }
 0x770   :  { %3098 = vsyncpa [#allocation6], 1 }
 0x771   :  { %3099 = vsyncpa [#allocation9], 1 }
 0x772   :  { %3100 = vsyncpa [#allocation4], 1 }

</bundles_post_ra>
